<compile_context>
chip_gen: v6e
topology: v6e:2x2x1
jax: 0.10.0
libtpu: 0.0.40
codegen_flags: <defaults>
</compile_context>

<pallas_src>
import jax
import jax.numpy as jnp
import numpy as np
from jax import lax
from jax.experimental import pallas as pl
from jax.experimental.pallas import tpu as pltpu

# ---------------- problem sizes (small, consistent with the module) ----------
B = 2          # batch
C_IN = 4       # input channels per image
H = W = 16     # spatial
HID = 32       # backbone / neck hidden channels
NUM_CLASSES = 2
ROWS = B * H * W            # 512 pixels
K_RAW = 9 * C_IN            # 36   im2col width for a 3x3 conv
K_PAD = 128                 # padded to a full lane tile / MXU K pass
N_PAD = 128                 # head output padded lane-dense


def _pick_tile_rows():
    """v7x has 2 TensorCores -> 2 parallel tiles; v5e/v6e single-TC -> 1 step."""
    try:
        kind = jax.devices()[0].device_kind.lower()
    except Exception:  # pragma: no cover - defensive
        kind = ""
    if "v7" in kind or "7x" in kind:
        return ROWS // 2
    return ROWS


TILE_ROWS = _pick_tile_rows()
GRID_STEPS = ROWS // TILE_ROWS


# ---------------- Pallas kernel ----------------------------------------------
def cd_temporal_kernel(p_ref, wb_ref, bb_ref, wn_ref, bn_ref,
                       wh_ref, bh_ref, out_ref):
    """Fused backbone (one conv-as-matmul over both frames) + Concat neck + head.

    p_ref  : (2*TILE_ROWS, K_PAD)  im2col patches; rows [:T]=frame1, [T:]=frame2
    wb_ref : (K_PAD, HID)          backbone conv weight (flattened, zero-padded)
    bb_ref : (1, HID)              backbone bias
    wn_ref : (2*HID, HID)          neck weight (rows 0:HID act on feat1, rows
                                   HID:2*HID on feat2 == temporal Concat)
    bn_ref : (1, HID)              neck bias
    wh_ref : (HID, N_PAD)          decode-head 1x1 weight, zero-padded columns
    bh_ref : (1, N_PAD)            decode-head bias, zero-padded
    out_ref: (TILE_ROWS, N_PAD)    lane-dense padded logits
    """
    t = out_ref.shape[0]

    # Single fused backbone matmul over both temporal frames (shared weights).
    f = jnp.dot(p_ref[...], wb_ref[...], preferred_element_type=jnp.float32)
    f = jnp.maximum(f + bb_ref[...], 0.0)                    # (2t, HID)

    # mode == 'Concat': channel-concat of the two frames, single neck matmul.
    ff = jnp.concatenate([f[:t, :], f[t:, :]], axis=1)       # (t, 2*HID)
    neck = jnp.dot(ff, wn_ref[...], preferred_element_type=jnp.float32)
    neck = jnp.maximum(neck + bn_ref[...], 0.0)              # (t, HID)

    # decode head (1x1 conv), padded to a full 128-lane output.
    out_ref[...] = (jnp.dot(neck, wh_ref[...],
                            preferred_element_type=jnp.float32) + bh_ref[...])


# ---------------- glue: im2col + pallas_call ----------------------------------
def _im2col_both(img1_nchw, img2_nchw):
    """Both frames -> (2*ROWS, K_PAD) patch matrix, per-tile frame-interleaved
    so each grid block holds [frame1 rows | frame2 rows] of that tile."""
    x = jnp.stack([img1_nchw, img2_nchw], axis=0)            # (2, B, C, H, W)
    x = jnp.transpose(x, (0, 1, 3, 4, 2)).reshape(2 * B, H, W, C_IN)
    xp = jnp.pad(x, ((0, 0), (1, 1), (1, 1), (0, 0)))
    taps = [xp[:, kh:kh + H, kw:kw + W, :]
            for kh in range(3) for kw in range(3)]
    patches = jnp.concatenate(taps, axis=-1)                 # (2B, H, W, 36)
    patches = patches.reshape(2, ROWS, K_RAW)
    patches = jnp.pad(patches, ((0, 0), (0, 0), (0, K_PAD - K_RAW)))
    # tile-interleave: (frame, tile, T, K) -> (tile, frame, T, K) -> flat rows
    patches = patches.reshape(2, GRID_STEPS, TILE_ROWS, K_PAD)
    patches = jnp.transpose(patches, (1, 0, 2, 3)).reshape(2 * ROWS, K_PAD)
    return patches


@jax.jit
def cd_temporal_forward(img1_nchw, img2_nchw, params):
    """img1, img2: (B, C_IN, H, W) float32 (PyTorch NCHW convention).
    Returns logits (B, NUM_CLASSES, H, W)."""
    wb, bb, wn, bn, wh, bh = params

    # pad weights to MXU-/lane-friendly widths (zeros => numerically identical)
    wb_p = jnp.pad(wb, ((0, K_PAD - K_RAW), (0, 0)))
    wh_p = jnp.pad(wh, ((0, 0), (0, N_PAD - NUM_CLASSES)))
    bh_p = jnp.pad(bh, ((0, 0), (0, N_PAD - NUM_CLASSES)))

    p = _im2col_both(img1_nchw, img2_nchw)

    full = lambda shape: pl.BlockSpec(shape, lambda i: (0, 0))

    out_flat = pl.pallas_call(
        cd_temporal_kernel,
        out_shape=jax.ShapeDtypeStruct((ROWS, N_PAD), jnp.float32),
        grid=(GRID_STEPS,),
        in_specs=[
            pl.BlockSpec((2 * TILE_ROWS, K_PAD), lambda i: (i, 0)),  # patches
            full((K_PAD, HID)),             # backbone weight
            full((1, HID)),                 # backbone bias
            full((2 * HID, HID)),           # neck weight
            full((1, HID)),                 # neck bias
            full((HID, N_PAD)),             # head weight (padded)
            full((1, N_PAD)),               # head bias (padded)
        ],
        out_specs=pl.BlockSpec((TILE_ROWS, N_PAD), lambda i: (i, 0)),
        compiler_params=pltpu.CompilerParams(
            dimension_semantics=("parallel",)),
    )(p, wb_p, bb, wn, bn, wh_p, bh_p)

    # strip padding, (B*H*W, NUM_CLASSES) -> (B, NUM_CLASSES, H, W)
    out = out_flat[:, :NUM_CLASSES].reshape(B, H, W, NUM_CLASSES)
    return jnp.transpose(out, (0, 3, 1, 2))


# ---------------- pure-JAX reference (for verification) -----------------------
def reference_forward(img1_nchw, img2_nchw, params):
    wb, bb, wn, bn, wh, bh = params
    w_hwio = wb.reshape(3, 3, C_IN, HID)

    def backbone(x_nchw):
        x = jnp.transpose(x_nchw, (0, 2, 3, 1))  # NHWC
        y = lax.conv_general_dilated(
            x, w_hwio, window_strides=(1, 1), padding='SAME',
            dimension_numbers=('NHWC', 'HWIO', 'NHWC'))
        return jnp.maximum(y + bb.reshape(1, 1, 1, HID), 0.0)

    f1 = backbone(img1_nchw)
    f2 = backbone(img2_nchw)
    # Concat along temporal dim + Conv3d(kernel=(2,1,1)) neck
    neck = (jnp.einsum('bhwc,co->bhwo', f1, wn[:HID, :]) +
            jnp.einsum('bhwc,co->bhwo', f2, wn[HID:, :]))
    neck = jnp.maximum(neck + bn.reshape(1, 1, 1, HID), 0.0)
    out = jnp.einsum('bhwc,co->bhwo', neck, wh) + bh.reshape(1, 1, 1, NUM_CLASSES)
    return jnp.transpose(out, (0, 3, 1, 2))


# ---------------- main ---------------------------------------------------------
if __name__ == "__main__":
    key = jax.random.PRNGKey(0)
    k_i1, k_i2, k_wb, k_bb, k_wn, k_bn, k_wh, k_bh = jax.random.split(key, 8)

    img1 = jax.random.normal(k_i1, (B, C_IN, H, W), dtype=jnp.float32)
    img2 = jax.random.normal(k_i2, (B, C_IN, H, W), dtype=jnp.float32)

    # deterministic synthetic parameters (small scale to keep values tame)
    wb = 0.1 * jax.random.normal(k_wb, (K_RAW, HID), dtype=jnp.float32)
    bb = 0.1 * jax.random.normal(k_bb, (1, HID), dtype=jnp.float32)
    wn = 0.1 * jax.random.normal(k_wn, (2 * HID, HID), dtype=jnp.float32)
    bn = 0.1 * jax.random.normal(k_bn, (1, HID), dtype=jnp.float32)
    wh = 0.1 * jax.random.normal(k_wh, (HID, NUM_CLASSES), dtype=jnp.float32)
    bh = 0.1 * jax.random.normal(k_bh, (1, NUM_CLASSES), dtype=jnp.float32)
    params = (wb, bb, wn, bn, wh, bh)

    out = jax.block_until_ready(cd_temporal_forward(img1, img2, params))
    ref = jax.block_until_ready(reference_forward(img1, img2, params))
    np.testing.assert_allclose(np.asarray(out), np.asarray(ref),
                               rtol=1e-3, atol=1e-3)

    print("KERNEL_OK")
</pallas_src>

<mosaic_0001>
module attributes {stable_mosaic.version = 11 : i64} {
  func.func @cd_temporal_kernel(%arg0: i32, %arg1: memref<1024x128xf32, #tpu.memory_space<vmem>>, %arg2: memref<128x32xf32, #tpu.memory_space<vmem>>, %arg3: memref<1x32xf32, #tpu.memory_space<vmem>>, %arg4: memref<64x32xf32, #tpu.memory_space<vmem>>, %arg5: memref<1x32xf32, #tpu.memory_space<vmem>>, %arg6: memref<32x128xf32, #tpu.memory_space<vmem>>, %arg7: memref<1x128xf32, #tpu.memory_space<vmem>>, %arg8: memref<512x128xf32, #tpu.memory_space<vmem>>) attributes {dimension_semantics = [#tpu.dimension_semantics<parallel>], iteration_bounds = array<i64: 1>, scalar_prefetch = 0 : i64, scratch_operands = 0 : i64, tpu.core_type = #tpu.core_type<tc>, window_params = [{transform_indices = @transform_0, window_bounds = array<i64: 1024, 128>}, {pipeline_mode = #tpu.pipeline_mode<synchronous>, transform_indices = @transform_1, window_bounds = array<i64: 128, 32>}, {pipeline_mode = #tpu.pipeline_mode<synchronous>, transform_indices = @transform_2, window_bounds = array<i64: 1, 32>}, {pipeline_mode = #tpu.pipeline_mode<synchronous>, transform_indices = @transform_3, window_bounds = array<i64: 64, 32>}, {pipeline_mode = #tpu.pipeline_mode<synchronous>, transform_indices = @transform_4, window_bounds = array<i64: 1, 32>}, {pipeline_mode = #tpu.pipeline_mode<synchronous>, transform_indices = @transform_5, window_bounds = array<i64: 32, 128>}, {pipeline_mode = #tpu.pipeline_mode<synchronous>, transform_indices = @transform_6, window_bounds = array<i64: 1, 128>}, {transform_indices = @transform_7, window_bounds = array<i64: 512, 128>}]} {
    %c0 = arith.constant 0 : index
    %c0_0 = arith.constant 0 : index
    %0 = vector.load %arg1[%c0, %c0_0] : memref<1024x128xf32, #tpu.memory_space<vmem>>, vector<1024x128xf32>
    %c0_1 = arith.constant 0 : index
    %c0_2 = arith.constant 0 : index
    %1 = vector.load %arg2[%c0_1, %c0_2] : memref<128x32xf32, #tpu.memory_space<vmem>>, vector<128x32xf32>
    %cst = arith.constant dense<0.000000e+00> : vector<1024x32xf32>
    %2 = tpu.matmul %0, %1, %cst {dimension_numbers = #tpu.dot_dimension_numbers<[1], [0], [0], [1], [0, 0, 1, 1], [], []>} : vector<1024x128xf32>, vector<128x32xf32>, vector<1024x32xf32> -> vector<1024x32xf32>
    %c0_3 = arith.constant 0 : index
    %c0_4 = arith.constant 0 : index
    %3 = vector.load %arg3[%c0_3, %c0_4] : memref<1x32xf32, #tpu.memory_space<vmem>>, vector<1x32xf32>
    %4 = vector.broadcast %3 : vector<1x32xf32> to vector<1024x32xf32>
    %5 = arith.addf %2, %4 : vector<1024x32xf32>
    %cst_5 = arith.constant 0.000000e+00 : f32
    %6 = vector.broadcast %cst_5 : f32 to vector<1024x32xf32>
    %7 = arith.maximumf %5, %6 : vector<1024x32xf32>
    %8 = vector.extract_strided_slice %7 {offsets = [0, 0], sizes = [512, 32], strides = [1, 1]} : vector<1024x32xf32> to vector<512x32xf32>
    %9 = vector.extract_strided_slice %7 {offsets = [512, 0], sizes = [512, 32], strides = [1, 1]} : vector<1024x32xf32> to vector<512x32xf32>
    %10 = tpu.concatenate %8, %9 in 1 : vector<512x32xf32>, vector<512x32xf32> -> vector<512x64xf32>
    %c0_6 = arith.constant 0 : index
    %c0_7 = arith.constant 0 : index
    %11 = vector.load %arg4[%c0_6, %c0_7] : memref<64x32xf32, #tpu.memory_space<vmem>>, vector<64x32xf32>
    %cst_8 = arith.constant dense<0.000000e+00> : vector<512x32xf32>
    %12 = tpu.matmul %10, %11, %cst_8 {dimension_numbers = #tpu.dot_dimension_numbers<[1], [0], [0], [1], [0, 0, 1, 1], [], []>} : vector<512x64xf32>, vector<64x32xf32>, vector<512x32xf32> -> vector<512x32xf32>
    %c0_9 = arith.constant 0 : index
    %c0_10 = arith.constant 0 : index
    %13 = vector.load %arg5[%c0_9, %c0_10] : memref<1x32xf32, #tpu.memory_space<vmem>>, vector<1x32xf32>
    %14 = vector.broadcast %13 : vector<1x32xf32> to vector<512x32xf32>
    %15 = arith.addf %12, %14 : vector<512x32xf32>
    %cst_11 = arith.constant 0.000000e+00 : f32
    %16 = vector.broadcast %cst_11 : f32 to vector<512x32xf32>
    %17 = arith.maximumf %15, %16 : vector<512x32xf32>
    %c0_12 = arith.constant 0 : index
    %c0_13 = arith.constant 0 : index
    %18 = vector.load %arg6[%c0_12, %c0_13] : memref<32x128xf32, #tpu.memory_space<vmem>>, vector<32x128xf32>
    %cst_14 = arith.constant dense<0.000000e+00> : vector<512x128xf32>
    %19 = tpu.matmul %17, %18, %cst_14 {dimension_numbers = #tpu.dot_dimension_numbers<[1], [0], [0], [1], [0, 0, 1, 1], [], []>} : vector<512x32xf32>, vector<32x128xf32>, vector<512x128xf32> -> vector<512x128xf32>
    %c0_15 = arith.constant 0 : index
    %c0_16 = arith.constant 0 : index
    %20 = vector.load %arg7[%c0_15, %c0_16] : memref<1x128xf32, #tpu.memory_space<vmem>>, vector<1x128xf32>
    %21 = vector.broadcast %20 : vector<1x128xf32> to vector<512x128xf32>
    %22 = arith.addf %19, %21 : vector<512x128xf32>
    %c0_17 = arith.constant 0 : index
    %c0_18 = arith.constant 0 : index
    %23 = vector.load %arg8[%c0_17, %c0_18] : memref<512x128xf32, #tpu.memory_space<vmem>>, vector<512x128xf32>
    tpu.vector_store %arg8[%c0_17, %c0_18], %22 {strides = array<i32>} : memref<512x128xf32, #tpu.memory_space<vmem>>, vector<512x128xf32>,
    return
  }
  func.func @transform_0(%arg0: i32) -> (i32, i32) {
    %c0_i32 = arith.constant 0 : i32
    %c0_i32_0 = arith.constant 0 : i32
    return %arg0, %c0_i32 : i32, i32
  }
  func.func @transform_1(%arg0: i32) -> (i32, i32) {
    %c0_i32 = arith.constant 0 : i32
    %c0_i32_0 = arith.constant 0 : i32
    %c0_i32_1 = arith.constant 0 : i32
    return %c0_i32, %c0_i32_0 : i32, i32
  }
  func.func @transform_2(%arg0: i32) -> (i32, i32) {
    %c0_i32 = arith.constant 0 : i32
    %c0_i32_0 = arith.constant 0 : i32
    %c0_i32_1 = arith.constant 0 : i32
    return %c0_i32, %c0_i32_0 : i32, i32
  }
  func.func @transform_3(%arg0: i32) -> (i32, i32) {
    %c0_i32 = arith.constant 0 : i32
    %c0_i32_0 = arith.constant 0 : i32
    %c0_i32_1 = arith.constant 0 : i32
    return %c0_i32, %c0_i32_0 : i32, i32
  }
  func.func @transform_4(%arg0: i32) -> (i32, i32) {
    %c0_i32 = arith.constant 0 : i32
    %c0_i32_0 = arith.constant 0 : i32
    %c0_i32_1 = arith.constant 0 : i32
    return %c0_i32, %c0_i32_0 : i32, i32
  }
  func.func @transform_5(%arg0: i32) -> (i32, i32) {
    %c0_i32 = arith.constant 0 : i32
    %c0_i32_0 = arith.constant 0 : i32
    %c0_i32_1 = arith.constant 0 : i32
    return %c0_i32, %c0_i32_0 : i32, i32
  }
  func.func @transform_6(%arg0: i32) -> (i32, i32) {
    %c0_i32 = arith.constant 0 : i32
    %c0_i32_0 = arith.constant 0 : i32
    %c0_i32_1 = arith.constant 0 : i32
    return %c0_i32, %c0_i32_0 : i32, i32
  }
  func.func @transform_7(%arg0: i32) -> (i32, i32) {
    %c0_i32 = arith.constant 0 : i32
    %c0_i32_0 = arith.constant 0 : i32
    return %arg0, %c0_i32 : i32, i32
  }
}

</mosaic_0001>

<bundles_post_ra>
// kernel: cd_temporal_forward.1
= control target key start
LH: loop header
LB: loop body
LE: loop exit
PB: predicated region body
PF: predicated region fallthrough
CT: control target
= control target key end

     0   :  { %vm1266_vm0 = vcmask 261120   ;;  %vm1346_vm1 = vcmask 523264   ;;  %s4915_s1 = inlined_call_operand.vmem [shape: f32[128,32], index: 1, kind: input, shape index: {}]   ;;  %s4916_s0 = inlined_call_operand.vmem [shape: f32[1024,128], index: 0, kind: input, shape index: {}]   ;;  %s4917_s3 = inlined_call_operand.vmem [shape: f32[64,32], index: 3, kind: input, shape index: {}]   ;;  %s4918_s2 = inlined_call_operand.vmem [shape: f32[1,32], index: 2, kind: input, shape index: {}]   ;;  %s4919_s5 = inlined_call_operand.vmem [shape: f32[32,128], index: 5, kind: input, shape index: {}]   ;;  %s4920_s4 = inlined_call_operand.vmem [shape: f32[1,32], index: 4, kind: input, shape index: {}]   ;;  %s4921_s6 = inlined_call_operand.vmem [shape: f32[1,128], index: 6, kind: input, shape index: {}]   ;;  %s4922_s7 = inlined_call_operand.vmem [shape: f32[512,128], index: 7, kind: output, shape index: {}]  }
   0x1   :  { %v169_v0 = vld [vmem:[%s4915_s1 + $0x78] sm:$0xff]  ;;  %v168_v1 = vld [vmem:[%s4915_s1 + $0x70] sm:$0xff]  ;;  %v167_v2 = vld [vmem:[%s4915_s1 + $0x68] sm:$0xff] }
   0x2   :  { %3059 = vmatprep.subr.mxu0 %v169_v0  ;;  %v166_v3 = vld [vmem:[%s4915_s1 + $0x60] sm:$0xff]  ;;  %v165_v5 = vld [vmem:[%s4915_s1 + $0x58] sm:$0xff]  ;;  %v164_v6 = vld [vmem:[%s4915_s1 + $0x50] sm:$0xff] }
   0x3   :  { %3060 = vmatpush3.msra.mxu0 %v169_v0  ;;  %v26_v4 = vld [vmem:[%s4916_s0] sm:$0xff]  ;;  %v163_v7 = vld [vmem:[%s4915_s1 + $0x48] sm:$0xff]  ;;  %v161_v9 = vld [vmem:[%s4915_s1 + $0x38] sm:$0xff] }
   0x4   :  { %3061 = vmatprep.subr.mxu0 %v168_v1  ;;  %3091 = vmatprep.mubr.f32.mxu0 %v26_v4  ;;  %v162_v8 = vld [vmem:[%s4915_s1 + $0x40] sm:$0xff]  ;;  %v160_v10 = vld [vmem:[%s4915_s1 + $0x30] sm:$0xff]  ;;  %v159_v11 = vld [vmem:[%s4915_s1 + $0x28] sm:$0xff] }
   0x5   :  { %3062 = vmatpush3.msra.mxu0 %v168_v1  ;;  %v158_v12 = vld [vmem:[%s4915_s1 + $0x20] sm:$0xff]  ;;  %v157_v13 = vld [vmem:[%s4915_s1 + $0x18] sm:$0xff]  ;;  %v156_v14 = vld [vmem:[%s4915_s1 + $0x10] sm:$0xff] }
   0x6   :  { %3063 = vmatprep.subr.mxu0 %v167_v2  ;;  %v155_v15 = vld [vmem:[%s4915_s1 + $0x8] sm:$0xff]  ;;  %v154_v16 = vld [vmem:[%s4915_s1] sm:$0xff]  ;;  %v28_v18 = vld [vmem:[%s4916_s0 + $0x10] sm:$0xff] }
   0x7   :  { %3064 = vmatpush3.msra.mxu0 %v167_v2  ;;  %v27_v17 = vld [vmem:[%s4916_s0 + $0x8] sm:$0xff]  ;;  %v29_v19 = vld [vmem:[%s4916_s0 + $0x18] sm:$0xff]  ;;  %v30_v20 = vld [vmem:[%s4916_s0 + $0x20] sm:$0xff] }
   0x8   :  { %3065 = vmatprep.subr.mxu0 %v166_v3  ;;  %v31_v21 = vld [vmem:[%s4916_s0 + $0x28] sm:$0xff]  ;;  %v32_v22 = vld [vmem:[%s4916_s0 + $0x30] sm:$0xff]  ;;  %v33_v23 = vld [vmem:[%s4916_s0 + $0x38] sm:$0xff] }
   0x9   :  { %3066 = vmatpush3.msra.mxu0 %v166_v3  ;;  %v34_v24 = vld [vmem:[%s4916_s0 + $0x40] sm:$0xff]  ;;  %v35_v25 = vld [vmem:[%s4916_s0 + $0x48] sm:$0xff]  ;;  %v36_v26 = vld [vmem:[%s4916_s0 + $0x50] sm:$0xff] }
   0xa   :  { %3067 = vmatprep.subr.mxu0 %v165_v5  ;;  %v37_v27 = vld [vmem:[%s4916_s0 + $0x58] sm:$0xff]  ;;  %v38_v28 = vld [vmem:[%s4916_s0 + $0x60] sm:$0xff]  ;;  %v39_v29 = vld [vmem:[%s4916_s0 + $0x68] sm:$0xff] }
   0xb   :  { %3068 = vmatpush3.msra.mxu0 %v165_v5  ;;  %v40_v30 = vld [vmem:[%s4916_s0 + $0x70] sm:$0xff]  ;;  %v41_v31 = vld [vmem:[%s4916_s0 + $0x78] sm:$0xff]  ;;  %v42_v32 = vld [vmem:[%s4916_s0 + $0x80] sm:$0xff] }
   0xc   :  { %3069 = vmatprep.subr.mxu0 %v164_v6  ;;  %v43_v33 = vld [vmem:[%s4916_s0 + $0x88] sm:$0xff]  ;;  %v44_v34 = vld [vmem:[%s4916_s0 + $0x90] sm:$0xff]  ;;  %v45_v35 = vld [vmem:[%s4916_s0 + $0x98] sm:$0xff] }
   0xd   :  { %3070 = vmatpush3.msra.mxu0 %v164_v6  ;;  %v46_v36 = vld [vmem:[%s4916_s0 + $0xa0] sm:$0xff]  ;;  %v47_v37 = vld [vmem:[%s4916_s0 + $0xa8] sm:$0xff]  ;;  %v48_v38 = vld [vmem:[%s4916_s0 + $0xb0] sm:$0xff] }
   0xe   :  { %3071 = vmatprep.subr.mxu0 %v163_v7  ;;  %v49_v39 = vld [vmem:[%s4916_s0 + $0xb8] sm:$0xff]  ;;  %v50_v40 = vld [vmem:[%s4916_s0 + $0xc0] sm:$0xff]  ;;  %v51_v41 = vld [vmem:[%s4916_s0 + $0xc8] sm:$0xff] }
   0xf   :  { %3072 = vmatpush3.msra.mxu0 %v163_v7  ;;  %v52_v42 = vld [vmem:[%s4916_s0 + $0xd0] sm:$0xff]  ;;  %v53_v43 = vld [vmem:[%s4916_s0 + $0xd8] sm:$0xff]  ;;  %v54_v44 = vld [vmem:[%s4916_s0 + $0xe0] sm:$0xff] }
  0x10   :  { %3073 = vmatprep.subr.mxu0 %v162_v8  ;;  %v55_v45 = vld [vmem:[%s4916_s0 + $0xe8] sm:$0xff]  ;;  %v56_v46 = vld [vmem:[%s4916_s0 + $0xf0] sm:$0xff]  ;;  %v57_v47 = vld [vmem:[%s4916_s0 + $0xf8] sm:$0xff] }
  0x11   :  { %3074 = vmatpush3.msra.mxu0 %v162_v8  ;;  %v58_v48 = vld [vmem:[%s4916_s0 + $0x100] sm:$0xff]  ;;  %v59_v49 = vld [vmem:[%s4916_s0 + $0x108] sm:$0xff]  ;;  %v60_v50 = vld [vmem:[%s4916_s0 + $0x110] sm:$0xff] }
  0x12   :  { %3075 = vmatprep.subr.mxu0 %v161_v9  ;;  %v61_v51 = vld [vmem:[%s4916_s0 + $0x118] sm:$0xff]  ;;  %v62_v52 = vld [vmem:[%s4916_s0 + $0x120] sm:$0xff]  ;;  %v63_v53 = vld [vmem:[%s4916_s0 + $0x128] sm:$0xff] }
  0x13   :  { %3076 = vmatpush3.msra.mxu0 %v161_v9  ;;  %v64_v54 = vld [vmem:[%s4916_s0 + $0x130] sm:$0xff]  ;;  %v65_v55 = vld [vmem:[%s4916_s0 + $0x138] sm:$0xff]  ;;  %v66_v56 = vld [vmem:[%s4916_s0 + $0x140] sm:$0xff] }
  0x14   :  { %3077 = vmatprep.subr.mxu0 %v160_v10  ;;  %v67_v57 = vld [vmem:[%s4916_s0 + $0x148] sm:$0xff]  ;;  %v68_v58 = vld [vmem:[%s4916_s0 + $0x150] sm:$0xff]  ;;  %v69_v59 = vld [vmem:[%s4916_s0 + $0x158] sm:$0xff] }
  0x15   :  { %3078 = vmatpush3.msra.mxu0 %v160_v10  ;;  %v70_v60 = vld [vmem:[%s4916_s0 + $0x160] sm:$0xff]  ;;  %v71_v61 = vld [vmem:[%s4916_s0 + $0x168] sm:$0xff]  ;;  %v72_v62 = vld [vmem:[%s4916_s0 + $0x170] sm:$0xff] }
  0x16   :  { %3079 = vmatprep.subr.mxu0 %v159_v11  ;;  %v73_v63 = vld [vmem:[%s4916_s0 + $0x178] sm:$0xff]  ;;  %v74_v0 = vld [vmem:[%s4916_s0 + $0x180] sm:$0xff]  ;;  %v75_v1 = vld [vmem:[%s4916_s0 + $0x188] sm:$0xff] }
  0x17   :  { %3080 = vmatpush3.msra.mxu0 %v159_v11  ;;  %v76_v2 = vld [vmem:[%s4916_s0 + $0x190] sm:$0xff]  ;;  %v77_v3 = vld [vmem:[%s4916_s0 + $0x198] sm:$0xff]  ;;  %v78_v4 = vld [vmem:[%s4916_s0 + $0x1a0] sm:$0xff] }
  0x18   :  { %3081 = vmatprep.subr.mxu0 %v158_v12  ;;  %v79_v5 = vld [vmem:[%s4916_s0 + $0x1a8] sm:$0xff]  ;;  %v80_v6 = vld [vmem:[%s4916_s0 + $0x1b0] sm:$0xff]  ;;  %v81_v7 = vld [vmem:[%s4916_s0 + $0x1b8] sm:$0xff] }
  0x19   :  { %3082 = vmatpush3.msra.mxu0 %v158_v12  ;;  %v82_v8 = vld [vmem:[%s4916_s0 + $0x1c0] sm:$0xff]  ;;  %v83_v9 = vld [vmem:[%s4916_s0 + $0x1c8] sm:$0xff]  ;;  %v84_v10 = vld [vmem:[%s4916_s0 + $0x1d0] sm:$0xff] }
  0x1a   :  { %3083 = vmatprep.subr.mxu0 %v157_v13  ;;  %v85_v11 = vld [vmem:[%s4916_s0 + $0x1d8] sm:$0xff]  ;;  %v86_v12 = vld [vmem:[%s4916_s0 + $0x1e0] sm:$0xff] }
  0x1b   :  { %3084 = vmatpush3.msra.mxu0 %v157_v13  ;;  %v87_v13 = vld [vmem:[%s4916_s0 + $0x1e8] sm:$0xff] }
  0x1c   :  { %3085 = vmatprep.subr.mxu0 %v156_v14 }
  0x1d   :  { %3086 = vmatpush3.msra.mxu0 %v156_v14  ;;  %v88_v14 = vld [vmem:[%s4916_s0 + $0x1f0] sm:$0xff] }
  0x1e   :  { %3087 = vmatprep.subr.mxu0 %v155_v15 }
  0x1f   :  { %3088 = vmatpush3.msra.mxu0 %v155_v15  ;;  %v89_v15 = vld [vmem:[%s4916_s0 + $0x1f8] sm:$0xff] }
  0x20   :  { %3089 = vmatprep.subr.mxu0 %v154_v16 }
  0x21   :  { %3090 = vmatpush3.msra.mxu0 %v154_v16  ;;  %v90_v16 = vld [vmem:[%s4916_s0 + $0x200] sm:$0xff] }
  0x22   :  { %3092 = vmatmul.mubr.f32.vlgmr.msra.gmra.mxu0 %v27_v17  ;;  %v91_v17 = vld [vmem:[%s4916_s0 + $0x208] sm:$0xff] }
  0x23   :  { %3094 = vmatprep.mubr.f32.mxu0 %v28_v18  ;;  %v92_v18 = vld [vmem:[%s4916_s0 + $0x210] sm:$0xff] }
  0x26   :  { %3095 = vmatmul.mubr.f32.gmra.mxu0 %v29_v19  ;;  %v93_v19 = vld [vmem:[%s4916_s0 + $0x218] sm:$0xff] }
  0x27   :  { %3097 = vmatprep.mubr.f32.mxu0 %v30_v20  ;;  %v94_v20 = vld [vmem:[%s4916_s0 + $0x220] sm:$0xff] }
  0x2a   :  { %3098 = vmatmul.mubr.f32.gmra.mxu0 %v31_v21  ;;  %v95_v21 = vld [vmem:[%s4916_s0 + $0x228] sm:$0xff] }
  0x2b   :  { %3100 = vmatprep.mubr.f32.mxu0 %v32_v22  ;;  %v96_v22 = vld [vmem:[%s4916_s0 + $0x230] sm:$0xff] }
  0x2e   :  { %3101 = vmatmul.mubr.f32.gmra.mxu0 %v33_v23  ;;  %v97_v23 = vld [vmem:[%s4916_s0 + $0x238] sm:$0xff] }
  0x2f   :  { %3103 = vmatprep.mubr.f32.mxu0 %v34_v24  ;;  %v98_v24 = vld [vmem:[%s4916_s0 + $0x240] sm:$0xff] }
  0x32   :  { %3104 = vmatmul.mubr.f32.gmra.mxu0 %v35_v25  ;;  %v99_v25 = vld [vmem:[%s4916_s0 + $0x248] sm:$0xff] }
  0x33   :  { %3106 = vmatprep.mubr.f32.mxu0 %v36_v26  ;;  %v100_v26 = vld [vmem:[%s4916_s0 + $0x250] sm:$0xff] }
  0x36   :  { %3107 = vmatmul.mubr.f32.gmra.mxu0 %v37_v27  ;;  %v101_v27 = vld [vmem:[%s4916_s0 + $0x258] sm:$0xff] }
  0x37   :  { %3109 = vmatprep.mubr.f32.mxu0 %v38_v28  ;;  %v102_v28 = vld [vmem:[%s4916_s0 + $0x260] sm:$0xff] }
  0x3a   :  { %3110 = vmatmul.mubr.f32.gmra.mxu0 %v39_v29  ;;  %v103_v29 = vld [vmem:[%s4916_s0 + $0x268] sm:$0xff] }
  0x3b   :  { %3112 = vmatprep.mubr.f32.mxu0 %v40_v30  ;;  %v104_v30 = vld [vmem:[%s4916_s0 + $0x270] sm:$0xff] }
  0x3e   :  { %3113 = vmatmul.mubr.f32.gmra.mxu0 %v41_v31  ;;  %v105_v31 = vld [vmem:[%s4916_s0 + $0x278] sm:$0xff] }
  0x3f   :  { %3115 = vmatprep.mubr.f32.mxu0 %v42_v32  ;;  %v106_v32 = vld [vmem:[%s4916_s0 + $0x280] sm:$0xff] }
  0x42   :  { %3116 = vmatmul.mubr.f32.gmra.mxu0 %v43_v33  ;;  %v107_v33 = vld [vmem:[%s4916_s0 + $0x288] sm:$0xff] }
  0x43   :  { %3118 = vmatprep.mubr.f32.mxu0 %v44_v34  ;;  %v108_v34 = vld [vmem:[%s4916_s0 + $0x290] sm:$0xff] }
  0x46   :  { %3119 = vmatmul.mubr.f32.gmra.mxu0 %v45_v35  ;;  %v109_v35 = vld [vmem:[%s4916_s0 + $0x298] sm:$0xff] }
  0x47   :  { %3121 = vmatprep.mubr.f32.mxu0 %v46_v36  ;;  %v110_v36 = vld [vmem:[%s4916_s0 + $0x2a0] sm:$0xff] }
  0x4a   :  { %3122 = vmatmul.mubr.f32.gmra.mxu0 %v47_v37  ;;  %v111_v37 = vld [vmem:[%s4916_s0 + $0x2a8] sm:$0xff] }
  0x4b   :  { %3124 = vmatprep.mubr.f32.mxu0 %v48_v38  ;;  %v112_v38 = vld [vmem:[%s4916_s0 + $0x2b0] sm:$0xff] }
  0x4e   :  { %3125 = vmatmul.mubr.f32.gmra.mxu0 %v49_v39  ;;  %v113_v39 = vld [vmem:[%s4916_s0 + $0x2b8] sm:$0xff] }
  0x4f   :  { %3127 = vmatprep.mubr.f32.mxu0 %v50_v40  ;;  %v114_v40 = vld [vmem:[%s4916_s0 + $0x2c0] sm:$0xff] }
  0x52   :  { %3128 = vmatmul.mubr.f32.gmra.mxu0 %v51_v41  ;;  %v115_v41 = vld [vmem:[%s4916_s0 + $0x2c8] sm:$0xff] }
  0x53   :  { %3130 = vmatprep.mubr.f32.mxu0 %v52_v42  ;;  %v116_v42 = vld [vmem:[%s4916_s0 + $0x2d0] sm:$0xff] }
  0x56   :  { %3131 = vmatmul.mubr.f32.gmra.mxu0 %v53_v43  ;;  %v117_v43 = vld [vmem:[%s4916_s0 + $0x2d8] sm:$0xff] }
  0x57   :  { %3133 = vmatprep.mubr.f32.mxu0 %v54_v44  ;;  %v118_v44 = vld [vmem:[%s4916_s0 + $0x2e0] sm:$0xff] }
  0x5a   :  { %3134 = vmatmul.mubr.f32.gmra.mxu0 %v55_v45  ;;  %v119_v45 = vld [vmem:[%s4916_s0 + $0x2e8] sm:$0xff] }
  0x5b   :  { %3136 = vmatprep.mubr.f32.mxu0 %v56_v46  ;;  %v120_v46 = vld [vmem:[%s4916_s0 + $0x2f0] sm:$0xff] }
  0x5e   :  { %3137 = vmatmul.mubr.f32.gmra.mxu0 %v57_v47  ;;  %v121_v47 = vld [vmem:[%s4916_s0 + $0x2f8] sm:$0xff] }
  0x5f   :  { %3139 = vmatprep.mubr.f32.mxu0 %v58_v48  ;;  %v122_v48 = vld [vmem:[%s4916_s0 + $0x300] sm:$0xff] }
  0x62   :  { %3140 = vmatmul.mubr.f32.gmra.mxu0 %v59_v49  ;;  %v123_v49 = vld [vmem:[%s4916_s0 + $0x308] sm:$0xff] }
  0x63   :  { %3142 = vmatprep.mubr.f32.mxu0 %v60_v50  ;;  %v124_v50 = vld [vmem:[%s4916_s0 + $0x310] sm:$0xff] }
  0x66   :  { %3143 = vmatmul.mubr.f32.gmra.mxu0 %v61_v51 }
  0x67   :  { %3145 = vmatprep.mubr.f32.mxu0 %v62_v52  ;;  %v125_v52 = vld [vmem:[%s4916_s0 + $0x318] sm:$0xff] }
  0x6a   :  { %3146 = vmatmul.mubr.f32.gmra.mxu0 %v63_v53 }
  0x6b   :  { %3148 = vmatprep.mubr.f32.mxu0 %v64_v54  ;;  %v126_v54 = vld [vmem:[%s4916_s0 + $0x320] sm:$0xff] }
  0x6e   :  { %3149 = vmatmul.mubr.f32.gmra.mxu0 %v65_v55 }
  0x6f   :  { %3151 = vmatprep.mubr.f32.mxu0 %v66_v56  ;;  %v127_v56 = vld [vmem:[%s4916_s0 + $0x328] sm:$0xff] }
  0x72   :  { %3152 = vmatmul.mubr.f32.gmra.mxu0 %v67_v57 }
  0x73   :  { %3154 = vmatprep.mubr.f32.mxu0 %v68_v58  ;;  %v128_v58 = vld [vmem:[%s4916_s0 + $0x330] sm:$0xff] }
  0x76   :  { %3155 = vmatmul.mubr.f32.gmra.mxu0 %v69_v59 }
  0x77   :  { %3157 = vmatprep.mubr.f32.mxu0 %v70_v60  ;;  %v129_v60 = vld [vmem:[%s4916_s0 + $0x338] sm:$0xff] }
  0x7a   :  { %3158 = vmatmul.mubr.f32.gmra.mxu0 %v71_v61 }
  0x7b   :  { %3160 = vmatprep.mubr.f32.mxu0 %v72_v62  ;;  %v130_v62 = vld [vmem:[%s4916_s0 + $0x340] sm:$0xff] }
  0x7e   :  { %3161 = vmatmul.mubr.f32.gmra.mxu0 %v73_v63 }
  0x7f   :  { %3163 = vmatprep.mubr.f32.mxu0 %v74_v0  ;;  %v131_v0 = vld [vmem:[%s4916_s0 + $0x348] sm:$0xff] }
  0x82   :  { %3164 = vmatmul.mubr.f32.gmra.mxu0 %v75_v1 }
  0x83   :  { %3166 = vmatprep.mubr.f32.mxu0 %v76_v2  ;;  %v132_v2 = vld [vmem:[%s4916_s0 + $0x350] sm:$0xff] }
  0x86   :  { %3167 = vmatmul.mubr.f32.gmra.mxu0 %v77_v3 }
  0x87   :  { %3169 = vmatprep.mubr.f32.mxu0 %v78_v4  ;;  %v133_v4 = vld [vmem:[%s4916_s0 + $0x358] sm:$0xff] }
  0x8a   :  { %3170 = vmatmul.mubr.f32.gmra.mxu0 %v79_v5 }
  0x8b   :  { %3172 = vmatprep.mubr.f32.mxu0 %v80_v6  ;;  %v134_v6 = vld [vmem:[%s4916_s0 + $0x360] sm:$0xff] }
  0x8e   :  { %3173 = vmatmul.mubr.f32.gmra.mxu0 %v81_v7 }
  0x8f   :  { %3175 = vmatprep.mubr.f32.mxu0 %v82_v8  ;;  %v135_v8 = vld [vmem:[%s4916_s0 + $0x368] sm:$0xff] }
  0x92   :  { %3176 = vmatmul.mubr.f32.gmra.mxu0 %v83_v9 }
  0x93   :  { %3178 = vmatprep.mubr.f32.mxu0 %v84_v10  ;;  %v136_v10 = vld [vmem:[%s4916_s0 + $0x370] sm:$0xff] }
  0x96   :  { %3179 = vmatmul.mubr.f32.gmra.mxu0 %v85_v11 }
  0x97   :  { %3181 = vmatprep.mubr.f32.mxu0 %v86_v12  ;;  %v137_v12 = vld [vmem:[%s4916_s0 + $0x378] sm:$0xff] }
  0x9a   :  { %3182 = vmatmul.mubr.f32.gmra.mxu0 %v87_v13 }
  0x9b   :  { %3184 = vmatprep.mubr.f32.mxu0 %v88_v14  ;;  %v138_v14 = vld [vmem:[%s4916_s0 + $0x380] sm:$0xff] }
  0x9e   :  { %3185 = vmatmul.mubr.f32.gmra.mxu0 %v89_v15 }
  0x9f   :  { %3187 = vmatprep.mubr.f32.mxu0 %v90_v16  ;;  %v139_v16 = vld [vmem:[%s4916_s0 + $0x388] sm:$0xff] }
  0xa2   :  { %3188 = vmatmul.mubr.f32.gmra.mxu0 %v91_v17 }
  0xa3   :  { %3190 = vmatprep.mubr.f32.mxu0 %v92_v18  ;;  %v140_v18 = vld [vmem:[%s4916_s0 + $0x390] sm:$0xff] }
  0xa6   :  { %3191 = vmatmul.mubr.f32.gmra.mxu0 %v93_v19 }
  0xa7   :  { %3193 = vmatprep.mubr.f32.mxu0 %v94_v20  ;;  %v141_v20 = vld [vmem:[%s4916_s0 + $0x398] sm:$0xff] }
  0xaa   :  { %3194 = vmatmul.mubr.f32.gmra.mxu0 %v95_v21 }
  0xab   :  { %3196 = vmatprep.mubr.f32.mxu0 %v96_v22  ;;  %v142_v22 = vld [vmem:[%s4916_s0 + $0x3a0] sm:$0xff] }
  0xae   :  { %3197 = vmatmul.mubr.f32.gmra.mxu0 %v97_v23 }
  0xaf   :  { %3199 = vmatprep.mubr.f32.mxu0 %v98_v24  ;;  %v143_v24 = vld [vmem:[%s4916_s0 + $0x3a8] sm:$0xff] }
  0xb2   :  { %3200 = vmatmul.mubr.f32.gmra.mxu0 %v99_v25 }
  0xb3   :  { %3202 = vmatprep.mubr.f32.mxu0 %v100_v26  ;;  %v144_v26 = vld [vmem:[%s4916_s0 + $0x3b0] sm:$0xff] }
  0xb6   :  { %3203 = vmatmul.mubr.f32.gmra.mxu0 %v101_v27 }
  0xb7   :  { %3205 = vmatprep.mubr.f32.mxu0 %v102_v28  ;;  %v145_v28 = vld [vmem:[%s4916_s0 + $0x3b8] sm:$0xff] }
  0xba   :  { %3206 = vmatmul.mubr.f32.gmra.mxu0 %v103_v29 }
  0xbb   :  { %3208 = vmatprep.mubr.f32.mxu0 %v104_v30  ;;  %v146_v30 = vld [vmem:[%s4916_s0 + $0x3c0] sm:$0xff] }
  0xbe   :  { %3209 = vmatmul.mubr.f32.gmra.mxu0 %v105_v31 }
  0xbf   :  { %3211 = vmatprep.mubr.f32.mxu0 %v106_v32  ;;  %v147_v32 = vld [vmem:[%s4916_s0 + $0x3c8] sm:$0xff] }
  0xc2   :  { %3212 = vmatmul.mubr.f32.gmra.mxu0 %v107_v33 }
  0xc3   :  { %3214 = vmatprep.mubr.f32.mxu0 %v108_v34  ;;  %v148_v34 = vld [vmem:[%s4916_s0 + $0x3d0] sm:$0xff] }
  0xc6   :  { %3215 = vmatmul.mubr.f32.gmra.mxu0 %v109_v35 }
  0xc7   :  { %3217 = vmatprep.mubr.f32.mxu0 %v110_v36  ;;  %v149_v36 = vld [vmem:[%s4916_s0 + $0x3d8] sm:$0xff] }
  0xca   :  { %3218 = vmatmul.mubr.f32.gmra.mxu0 %v111_v37 }
  0xcb   :  { %3220 = vmatprep.mubr.f32.mxu0 %v112_v38  ;;  %v150_v38 = vld [vmem:[%s4916_s0 + $0x3e0] sm:$0xff] }
  0xce   :  { %3221 = vmatmul.mubr.f32.gmra.mxu0 %v113_v39 }
  0xcf   :  { %3223 = vmatprep.mubr.f32.mxu0 %v114_v40  ;;  %v151_v40 = vld [vmem:[%s4916_s0 + $0x3e8] sm:$0xff] }
  0xd2   :  { %3224 = vmatmul.mubr.f32.gmra.mxu0 %v115_v41 }
  0xd3   :  { %3226 = vmatprep.mubr.f32.mxu0 %v116_v42  ;;  %v152_v42 = vld [vmem:[%s4916_s0 + $0x3f0] sm:$0xff] }
  0xd6   :  { %3227 = vmatmul.mubr.f32.gmra.mxu0 %v117_v43 }
  0xd7   :  { %3229 = vmatprep.mubr.f32.mxu0 %v118_v44  ;;  %v153_v44 = vld [vmem:[%s4916_s0 + $0x3f8] sm:$0xff] }
  0xda   :  { %3230 = vmatmul.mubr.f32.gmra.mxu0 %v119_v45 }
  0xdb   :  { %3232 = vmatprep.mubr.f32.mxu0 %v120_v46 }
  0xde   :  { %3233 = vmatmul.mubr.f32.gmra.mxu0 %v121_v47 }
  0xdf   :  { %3235 = vmatprep.mubr.f32.mxu0 %v122_v48 }
  0xe2   :  { %v3887_v51 = vpop.f32.mrf.mxu0  ;;  %3236 = vmatmul.mubr.f32.gmra.mxu0 %v123_v49 }
  0xe3   :  { %3238 = vmatprep.mubr.f32.mxu0 %v124_v50 }
  0xe4   :  { %v3892_v53 = vpop.f32.mrf.mxu0 }
  0xe6   :  { %v3897_v55 = vpop.f32.mrf.mxu0  ;;  %3239 = vmatmul.mubr.f32.gmra.mxu0 %v125_v52 }
  0xe7   :  { %3241 = vmatprep.mubr.f32.mxu0 %v126_v54 }
  0xe8   :  { %v3902_v57 = vpop.f32.mrf.mxu0 }
  0xea   :  { %v3907_v59 = vpop.f32.mrf.mxu0  ;;  %3242 = vmatmul.mubr.f32.gmra.mxu0 %v127_v56 }
  0xeb   :  { %3244 = vmatprep.mubr.f32.mxu0 %v128_v58 }
  0xec   :  { %v3912_v61 = vpop.f32.mrf.mxu0 }
  0xee   :  { %v3917_v63 = vpop.f32.mrf.mxu0  ;;  %3245 = vmatmul.mubr.f32.gmra.mxu0 %v129_v60 }
  0xef   :  { %3247 = vmatprep.mubr.f32.mxu0 %v130_v62 }
  0xf0   :  { %v3922_v1 = vpop.f32.mrf.mxu0 }
  0xf2   :  { %v3927_v3 = vpop.f32.mrf.mxu0  ;;  %3248 = vmatmul.mubr.f32.gmra.mxu0 %v131_v0 }
  0xf3   :  { %3250 = vmatprep.mubr.f32.mxu0 %v132_v2 }
  0xf4   :  { %v3932_v5 = vpop.f32.mrf.mxu0 }
  0xf6   :  { %v3937_v7 = vpop.f32.mrf.mxu0  ;;  %3251 = vmatmul.mubr.f32.gmra.mxu0 %v133_v4 }
  0xf7   :  { %3253 = vmatprep.mubr.f32.mxu0 %v134_v6 }
  0xf8   :  { %v3942_v9 = vpop.f32.mrf.mxu0 }
  0xfa   :  { %v3947_v11 = vpop.f32.mrf.mxu0  ;;  %3254 = vmatmul.mubr.f32.gmra.mxu0 %v135_v8 }
  0xfb   :  { %3256 = vmatprep.mubr.f32.mxu0 %v136_v10 }
  0xfc   :  { %v3952_v13 = vpop.f32.mrf.mxu0 }
  0xfe   :  { %v3957_v15 = vpop.f32.mrf.mxu0  ;;  %3257 = vmatmul.mubr.f32.gmra.mxu0 %v137_v12 }
  0xff   :  { %3259 = vmatprep.mubr.f32.mxu0 %v138_v14 }
 0x100   :  { %v3962_v17 = vpop.f32.mrf.mxu0 }
 0x102   :  { %v3967_v19 = vpop.f32.mrf.mxu0  ;;  %3260 = vmatmul.mubr.f32.gmra.mxu0 %v139_v16 }
 0x103   :  { %3262 = vmatprep.mubr.f32.mxu0 %v140_v18 }
 0x104   :  { %v3972_v21 = vpop.f32.mrf.mxu0 }
 0x106   :  { %v3977_v23 = vpop.f32.mrf.mxu0  ;;  %3263 = vmatmul.mubr.f32.gmra.mxu0 %v141_v20 }
 0x107   :  { %3265 = vmatprep.mubr.f32.mxu0 %v142_v22 }
 0x108   :  { %v3982_v25 = vpop.f32.mrf.mxu0 }
 0x10a   :  { %v3987_v27 = vpop.f32.mrf.mxu0  ;;  %3266 = vmatmul.mubr.f32.gmra.mxu0 %v143_v24 }
 0x10b   :  { %3268 = vmatprep.mubr.f32.mxu0 %v144_v26 }
 0x10c   :  { %v3992_v29 = vpop.f32.mrf.mxu0 }
 0x10e   :  { %v3997_v31 = vpop.f32.mrf.mxu0  ;;  %3269 = vmatmul.mubr.f32.gmra.mxu0 %v145_v28 }
 0x10f   :  { %3271 = vmatprep.mubr.f32.mxu0 %v146_v30  ;;  %v1338_v30 = vld [vmem:[%s4917_s3 + $0x38] sm:$0xff] }
 0x110   :  { %v4002_v33 = vpop.f32.mrf.mxu0  ;;  %3283 = vmatprep.subr.mxu1 %v1338_v30 }
 0x111   :  { %3284 = vmatpush3.msra.mxu1 %v1338_v30  ;;  %v1334_v30 = vld [vmem:[%s4917_s3 + $0x18] sm:$0xff] }
 0x112   :  { %v4007_v35 = vpop.f32.mrf.mxu0  ;;  %3272 = vmatmul.mubr.f32.gmra.mxu0 %v147_v32 }
 0x113   :  { %3274 = vmatprep.mubr.f32.mxu0 %v148_v34  ;;  %v1337_v34 = vld [vmem:[%s4917_s3 + $0x30] sm:$0xff] }
 0x114   :  { %v4012_v37 = vpop.f32.mrf.mxu0  ;;  %3285 = vmatprep.subr.mxu1 %v1337_v34 }
 0x115   :  { %3286 = vmatpush3.msra.mxu1 %v1337_v34 }
 0x116   :  { %v4017_v39 = vpop.f32.mrf.mxu0  ;;  %3275 = vmatmul.mubr.f32.gmra.mxu0 %v149_v36 }
 0x117   :  { %3277 = vmatprep.mubr.f32.mxu0 %v150_v38  ;;  %v1336_v38 = vld [vmem:[%s4917_s3 + $0x28] sm:$0xff] }
 0x118   :  { %v4022_v41 = vpop.f32.mrf.mxu0  ;;  %3287 = vmatprep.subr.mxu1 %v1336_v38 }
 0x119   :  { %3288 = vmatpush3.msra.mxu1 %v1336_v38  ;;  %v1333_v38 = vld [vmem:[%s4917_s3 + $0x10] sm:$0xff] }
 0x11a   :  { %v4027_v43 = vpop.f32.mrf.mxu0  ;;  %3278 = vmatmul.mubr.f32.gmra.mxu0 %v151_v40 }
 0x11b   :  { %3280 = vmatprep.mubr.f32.mxu0 %v152_v42  ;;  %v1335_v42 = vld [vmem:[%s4917_s3 + $0x20] sm:$0xff] }
 0x11c   :  { %v4032_v45 = vpop.f32.mrf.mxu0  ;;  %3289 = vmatprep.subr.mxu1 %v1335_v42 }
 0x11d   :  { %3290 = vmatpush3.msra.mxu1 %v1335_v42  ;;  %v1332_v42 = vld [vmem:[%s4917_s3 + $0x8] sm:$0xff] }
 0x11e   :  { %v4034_v46 = vpop.f32.mrf.mxu0  ;;  %3281 = vmatmul.mubr.f32.gmra.mxu0 %v153_v44  ;;  %3291 = vmatprep.subr.mxu1 %v1334_v30 }
 0x11f   :  { %3292 = vmatpush3.msra.mxu1 %v1334_v30  ;;  %v1331_v30 = vld [vmem:[%s4917_s3] sm:$0xff]  ;;  %s3501_s3 = smov 32  }
 0x120   :  { %v4036_v47 = vpop.f32.mrf.mxu0  ;;  %3293 = vmatprep.subr.mxu1 %v1333_v38 }
 0x121   :  { %3294 = vmatpush3.msra.mxu1 %v1333_v38  ;;  %v4129_v38 = vld [vmem:[%s4918_s2] ss:$0 sm:$0xff] }
 0x122   :  { %v4038_v48 = vpop.f32.mrf.mxu0  ;;  %3295 = vmatprep.subr.mxu1 %v1332_v42 }
 0x123   :  { %3296 = vmatpush3.msra.mxu1 %v1332_v42 }
 0x124   :  { %v4040_v49 = vpop.f32.mrf.mxu0  ;;  %3297 = vmatprep.subr.mxu1 %v1331_v30 }
 0x125   :  { %3298 = vmatpush3.msra.mxu1 %v1331_v30 }
 0x126   :  { %v4042_v50 = vpop.f32.mrf.mxu0 }
 0x128   :  { %v4044_v52 = vpop.f32.mrf.mxu0 }
 0x12a   :  { %v4046_v54 = vpop.f32.mrf.mxu0 }
 0x12c   :  { %v4048_v56 = vpop.f32.mrf.mxu0 }
 0x12e   :  { %v4050_v58 = vpop.f32.mrf.mxu0 }
 0x130   :  { %v4052_v60 = vpop.f32.mrf.mxu0 }
 0x132   :  { %v4054_v62 = vpop.f32.mrf.mxu0 }
 0x134   :  { %v4056_v0 = vpop.f32.mrf.mxu0 }
 0x136   :  { %v4058_v2 = vpop.f32.mrf.mxu0 }
 0x138   :  { %v4060_v4 = vpop.f32.mrf.mxu0 }
 0x13a   :  { %v4062_v6 = vpop.f32.mrf.mxu0 }
 0x13c   :  { %v4064_v8 = vpop.f32.mrf.mxu0 }
 0x13e   :  { %v4066_v10 = vpop.f32.mrf.mxu0 }
 0x13f   :  { %4923 = vst [vmem:[#allocation2_spill] sm:$0xff] %v4066_v10 }
 0x140   :  { %v4068_v12 = vpop.f32.mrf.mxu0 }
 0x142   :  { %v4070_v14 = vpop.f32.mrf.mxu0 }
 0x143   :  { %4924 = vst [vmem:[#allocation3_spill] sm:$0xff] %v4070_v14 }
 0x144   :  { %v4072_v16 = vpop.f32.mrf.mxu0 }
 0x145   :  { %4925 = vst [vmem:[#allocation4_spill] sm:$0xff] %v4072_v16 }
 0x146   :  { %v4074_v18 = vpop.f32.mrf.mxu0 }
 0x147   :  { %4926 = vst [vmem:[#allocation5_spill] sm:$0xff] %v4074_v18 }
 0x148   :  { %v4076_v20 = vpop.f32.mrf.mxu0 }
 0x149   :  { %4927 = vst [vmem:[#allocation6_spill] sm:$0xff] %v4076_v20 }
 0x14a   :  { %v4078_v22 = vpop.f32.mrf.mxu0 }
 0x14b   :  { %4928 = vst [vmem:[#allocation7_spill] sm:$0xff] %v4078_v22 }
 0x14c   :  { %v4080_v24 = vpop.f32.mrf.mxu0 }
 0x14d   :  { %4929 = vst [vmem:[#allocation8_spill] sm:$0xff] %v4080_v24 }
 0x14e   :  { %v4082_v26 = vpop.f32.mrf.mxu0 }
 0x14f   :  { %4930 = vst [vmem:[#allocation9_spill] sm:$0xff] %v4082_v26 }
 0x150   :  { %v4084_v28 = vpop.f32.mrf.mxu0 }
 0x151   :  { %4931 = vst [vmem:[#allocation10_spill] sm:$0xff] %v4084_v28 }
 0x152   :  { %v4089_v32 = vpop.f32.mrf.mxu0 }
 0x153   :  { %4932 = vst [vmem:[#allocation11_spill] sm:$0xff] %v4089_v32 }
 0x154   :  { %v4094_v36 = vpop.f32.mrf.mxu0 }
 0x155   :  { %4933 = vst [vmem:[#allocation12_spill] sm:$0xff] %v4094_v36 }
 0x156   :  { %v4099_v40 = vpop.f32.mrf.mxu0 }
 0x157   :  { %4934 = vst [vmem:[#allocation13_spill] sm:$0xff] %v4099_v40 }
 0x158   :  { %v4104_v44 = vpop.f32.mrf.mxu0 }
 0x159   :  { %4935 = vst [vmem:[#allocation14_spill] sm:$0xff] %v4104_v44 }
 0x15a   :  { %v4109_v34 = vpop.f32.mrf.mxu0 }
 0x15b   :  { %4936 = vst [vmem:[#allocation15_spill] sm:$0xff] %v4109_v34 }
 0x15c   :  { %v4114_v40 = vpop.f32.mrf.mxu0 }
 0x15d   :  { %4937 = vst [vmem:[#allocation16_spill] sm:$0xff] %v4114_v40 }
 0x15e   :  { %v4119_v44 = vpop.f32.mrf.mxu0 }
 0x15f   :  { %4938 = vst [vmem:[#allocation17_spill] sm:$0xff] %v4119_v44 }
 0x160   :  { %v4124_v34 = vpop.f32.mrf.mxu0 }
 0x161   :  { %4939 = vst [vmem:[#allocation18_spill] sm:$0xff] %v4124_v34 }
 0x162   :  { %v3189_v32 = vpop.f32.mrf.mxu0 }
 0x163   :  { %v569_v42 = vadd.f32 %v3189_v32, %v4129_v38 }
 0x164   :  { %v563_v40 = vpop.f32.mrf.mxu0 }
 0x165   :  { %v564_v36 = vadd.f32 %v4129_v38, %v563_v40  ;;  %v947_v34 = vmax.f32 %v569_v42, 0.0 }
 0x166   :  { %v3192_v26 = vpop.f32.mrf.mxu0 }
 0x167   :  { %v946_v44 = vmax.f32 %v564_v36, 0.0  ;;  %v579_v24 = vadd.f32 %v3192_v26, %v4129_v38 }
 0x168   :  { %v573_v28 = vpop.f32.mrf.mxu0 }
 0x169   :  { %v574_v22 = vadd.f32 %v4129_v38, %v573_v28  ;;  %1074 = vrot.lane.b32.xlu0 %v946_v44, %s3501_s3  ;;  %v949_v36 = vmax.f32 %v579_v24, 0.0 }
 0x16a   :  { %v3195_v30 = vpop.f32.mrf.mxu0 }
 0x16b   :  { %v948_v18 = vmax.f32 %v574_v22, 0.0  ;;  %v589_v40 = vadd.f32 %v3195_v30, %v4129_v38 }
 0x16c   :  { %v583_v20 = vpop.f32.mrf.mxu0 }
 0x16d   :  { %v584_v14 = vadd.f32 %v4129_v38, %v583_v20  ;;  %1078 = vrot.lane.b32.xlu1 %v948_v18, %s3501_s3  ;;  %1076 = vrot.lane.b32.xlu0 %v947_v34, %s3501_s3  ;;  %v951_v26 = vmax.f32 %v589_v40, 0.0 }
 0x16e   :  { %v3198_v32 = vpop.f32.mrf.mxu0 }
 0x16f   :  { %v950_v28 = vmax.f32 %v584_v14, 0.0  ;;  %v599_v20 = vadd.f32 %v3198_v32, %v4129_v38 }
 0x170   :  { %v593_v16 = vpop.f32.mrf.mxu0 }
 0x171   :  { %v594_v44 = vadd.f32 %v4129_v38, %v593_v16  ;;  %1080 = vrot.lane.b32.xlu1 %v949_v36, %s3501_s3  ;;  %1082 = vrot.lane.b32.xlu0 %v950_v28, %s3501_s3  ;;  %v953_v24 = vmax.f32 %v599_v20, 0.0 }
 0x172   :  { %v3201_v22 = vpop.f32.mrf.mxu0 }
 0x173   :  { %v952_v42 = vmax.f32 %v594_v44, 0.0  ;;  %v609_v16 = vadd.f32 %v3201_v22, %v4129_v38 }
 0x174   :  { %v603_v18 = vpop.f32.mrf.mxu0 }
 0x175   :  { %v604_v34 = vadd.f32 %v4129_v38, %v603_v18  ;;  %1084 = vrot.lane.b32.xlu1 %v951_v26, %s3501_s3  ;;  %1086 = vrot.lane.b32.xlu0 %v952_v42, %s3501_s3  ;;  %v955_v40 = vmax.f32 %v609_v16, 0.0 }
 0x176   :  { %v3204_v14 = vpop.f32.mrf.mxu0 }
 0x177   :  { %v954_v30 = vmax.f32 %v604_v34, 0.0  ;;  %v619_v44 = vadd.f32 %v3204_v14, %v4129_v38 }
 0x178   :  { %v613_v36 = vpop.f32.mrf.mxu0 }
 0x179   :  { %v614_v28 = vadd.f32 %v4129_v38, %v613_v36  ;;  %1088 = vrot.lane.b32.xlu1 %v953_v24, %s3501_s3  ;;  %1090 = vrot.lane.b32.xlu0 %v954_v30, %s3501_s3  ;;  %v957_v20 = vmax.f32 %v619_v44, 0.0 }
 0x17a   :  { %v3207_v32 = vpop.f32.mrf.mxu0 }
 0x17b   :  { %v956_v18 = vmax.f32 %v614_v28, 0.0  ;;  %v629_v34 = vadd.f32 %v3207_v32, %v4129_v38 }
 0x17c   :  { %v623_v26 = vpop.f32.mrf.mxu0 }
 0x17d   :  { %v624_v42 = vadd.f32 %v4129_v38, %v623_v26  ;;  %1092 = vrot.lane.b32.xlu1 %v955_v40, %s3501_s3  ;;  %1094 = vrot.lane.b32.xlu0 %v956_v18, %s3501_s3  ;;  %v959_v16 = vmax.f32 %v629_v34, 0.0 }
 0x17e   :  { %v3210_v22 = vpop.f32.mrf.mxu0 }
 0x17f   :  { %v958_v36 = vmax.f32 %v624_v42, 0.0  ;;  %v639_v28 = vadd.f32 %v3210_v22, %v4129_v38 }
 0x180   :  { %v633_v24 = vpop.f32.mrf.mxu0 }
 0x181   :  { %v634_v30 = vadd.f32 %v4129_v38, %v633_v24  ;;  %1096 = vrot.lane.b32.xlu1 %v957_v20, %s3501_s3  ;;  %1098 = vrot.lane.b32.xlu0 %v958_v36, %s3501_s3  ;;  %v961_v44 = vmax.f32 %v639_v28, 0.0 }
 0x182   :  { %v3213_v14 = vpop.f32.mrf.mxu0 }
 0x183   :  { %v960_v26 = vmax.f32 %v634_v30, 0.0  ;;  %v649_v42 = vadd.f32 %v3213_v14, %v4129_v38 }
 0x184   :  { %v643_v40 = vpop.f32.mrf.mxu0 }
 0x185   :  { %v644_v18 = vadd.f32 %v4129_v38, %v643_v40  ;;  %1100 = vrot.lane.b32.xlu1 %v959_v16, %s3501_s3  ;;  %1102 = vrot.lane.b32.xlu0 %v960_v26, %s3501_s3  ;;  %v963_v34 = vmax.f32 %v649_v42, 0.0 }
 0x186   :  { %v3216_v32 = vpop.f32.mrf.mxu0 }
 0x187   :  { %v962_v24 = vmax.f32 %v644_v18, 0.0  ;;  %v659_v30 = vadd.f32 %v3216_v32, %v4129_v38 }
 0x188   :  { %v653_v20 = vpop.f32.mrf.mxu0 }
 0x189   :  { %v654_v36 = vadd.f32 %v4129_v38, %v653_v20  ;;  %1104 = vrot.lane.b32.xlu1 %v961_v44, %s3501_s3  ;;  %1106 = vrot.lane.b32.xlu0 %v962_v24, %s3501_s3  ;;  %v965_v28 = vmax.f32 %v659_v30, 0.0 }
 0x18a   :  { %v3219_v22 = vpop.f32.mrf.mxu0 }
 0x18b   :  { %v964_v40 = vmax.f32 %v654_v36, 0.0  ;;  %v669_v18 = vadd.f32 %v3219_v22, %v4129_v38 }
 0x18c   :  { %v663_v16 = vpop.f32.mrf.mxu0 }
 0x18d   :  { %v664_v26 = vadd.f32 %v4129_v38, %v663_v16  ;;  %1108 = vrot.lane.b32.xlu1 %v963_v34, %s3501_s3  ;;  %1110 = vrot.lane.b32.xlu0 %v964_v40, %s3501_s3  ;;  %v967_v42 = vmax.f32 %v669_v18, 0.0 }
 0x18e   :  { %v3222_v14 = vpop.f32.mrf.mxu0 }
 0x18f   :  { %v966_v20 = vmax.f32 %v664_v26, 0.0  ;;  %v679_v36 = vadd.f32 %v3222_v14, %v4129_v38 }
 0x190   :  { %v673_v44 = vpop.f32.mrf.mxu0 }
 0x191   :  { %v674_v24 = vadd.f32 %v4129_v38, %v673_v44  ;;  %1112 = vrot.lane.b32.xlu1 %v965_v28, %s3501_s3  ;;  %1114 = vrot.lane.b32.xlu0 %v966_v20, %s3501_s3  ;;  %v969_v30 = vmax.f32 %v679_v36, 0.0 }
 0x192   :  { %v3225_v32 = vpop.f32.mrf.mxu0 }
 0x193   :  { %v968_v16 = vmax.f32 %v674_v24, 0.0  ;;  %v689_v26 = vadd.f32 %v3225_v32, %v4129_v38 }
 0x194   :  { %v683_v34 = vpop.f32.mrf.mxu0 }
 0x195   :  { %v684_v40 = vadd.f32 %v4129_v38, %v683_v34  ;;  %1116 = vrot.lane.b32.xlu1 %v967_v42, %s3501_s3  ;;  %1118 = vrot.lane.b32.xlu0 %v968_v16, %s3501_s3  ;;  %v971_v18 = vmax.f32 %v689_v26, 0.0 }
 0x196   :  { %v3228_v22 = vpop.f32.mrf.mxu0 }
 0x197   :  { %v970_v44 = vmax.f32 %v684_v40, 0.0  ;;  %v699_v24 = vadd.f32 %v3228_v22, %v4129_v38 }
 0x198   :  { %v693_v28 = vpop.f32.mrf.mxu0 }
 0x199   :  { %v694_v20 = vadd.f32 %v4129_v38, %v693_v28  ;;  %1120 = vrot.lane.b32.xlu1 %v969_v30, %s3501_s3  ;;  %1122 = vrot.lane.b32.xlu0 %v970_v44, %s3501_s3  ;;  %v973_v36 = vmax.f32 %v699_v24, 0.0 }
 0x19a   :  { %v3231_v14 = vpop.f32.mrf.mxu0 }
 0x19b   :  { %v972_v34 = vmax.f32 %v694_v20, 0.0  ;;  %v709_v40 = vadd.f32 %v3231_v14, %v4129_v38 }
 0x19c   :  { %v703_v42 = vpop.f32.mrf.mxu0 }
 0x19d   :  { %v704_v16 = vadd.f32 %v4129_v38, %v703_v42  ;;  %1124 = vrot.lane.b32.xlu1 %v971_v18, %s3501_s3  ;;  %1126 = vrot.lane.b32.xlu0 %v972_v34, %s3501_s3  ;;  %v975_v26 = vmax.f32 %v709_v40, 0.0 }
 0x19e   :  { %v3234_v32 = vpop.f32.mrf.mxu0 }
 0x19f   :  { %v974_v28 = vmax.f32 %v704_v16, 0.0  ;;  %v719_v20 = vadd.f32 %v3234_v32, %v4129_v38  ;;  %v4202_v32 = vld [vmem:[%s4919_s5 + $0x18] sm:$0xff] }
 0x1a0   :  { %v713_v30 = vpop.f32.mrf.mxu0  ;;  %3395 = vmatprep.subr.mxu1 %v4202_v32 }
 0x1a1   :  { %v714_v44 = vadd.f32 %v4129_v38, %v713_v30  ;;  %1128 = vrot.lane.b32.xlu1 %v973_v36, %s3501_s3  ;;  %1130 = vrot.lane.b32.xlu0 %v974_v28, %s3501_s3  ;;  %v977_v24 = vmax.f32 %v719_v20, 0.0 }
 0x1a2   :  { %v3237_v22 = vpop.f32.mrf.mxu0 }
 0x1a3   :  { %v976_v42 = vmax.f32 %v714_v44, 0.0  ;;  %v729_v16 = vadd.f32 %v3237_v22, %v4129_v38 }
 0x1a4   :  { %v723_v18 = vpop.f32.mrf.mxu0 }
 0x1a5   :  { %v724_v34 = vadd.f32 %v4129_v38, %v723_v18  ;;  %1132 = vrot.lane.b32.xlu1 %v975_v26, %s3501_s3  ;;  %1134 = vrot.lane.b32.xlu0 %v976_v42, %s3501_s3  ;;  %v979_v44 = vmax.f32 %v729_v16, 0.0 }
 0x1a6   :  { %v3240_v14 = vpop.f32.mrf.mxu0 }
 0x1a7   :  { %v978_v30 = vmax.f32 %v724_v34, 0.0  ;;  %v739_v26 = vadd.f32 %v3240_v14, %v4129_v38 }
 0x1a8   :  { %v733_v36 = vpop.f32.mrf.mxu0 }
 0x1a9   :  { %v734_v28 = vadd.f32 %v4129_v38, %v733_v36  ;;  %1136 = vrot.lane.b32.xlu1 %v977_v24, %s3501_s3  ;;  %1138 = vrot.lane.b32.xlu0 %v978_v30, %s3501_s3  ;;  %v981_v34 = vmax.f32 %v739_v26, 0.0 }
 0x1aa   :  { %v3243_v40 = vpop.f32.mrf.mxu0 }
 0x1ab   :  { %v980_v22 = vmax.f32 %v734_v28, 0.0  ;;  %v749_v24 = vadd.f32 %v3243_v40, %v4129_v38 }
 0x1ac   :  { %v743_v20 = vpop.f32.mrf.mxu0 }
 0x1ad   :  { %v744_v42 = vadd.f32 %v4129_v38, %v743_v20  ;;  %1140 = vrot.lane.b32.xlu1 %v979_v44, %s3501_s3  ;;  %1142 = vrot.lane.b32.xlu0 %v980_v22, %s3501_s3  ;;  %v983_v16 = vmax.f32 %v749_v24, 0.0 }
 0x1ae   :  { %v3246_v18 = vpop.f32.mrf.mxu0 }
 0x1af   :  { %v982_v30 = vmax.f32 %v744_v42, 0.0  ;;  %v759_v28 = vadd.f32 %v3246_v18, %v4129_v38 }
 0x1b0   :  { %v753_v36 = vpop.f32.mrf.mxu0 }
 0x1b1   :  { %v754_v10 = vadd.f32 %v4129_v38, %v753_v36  ;;  %1144 = vrot.lane.b32.xlu1 %v981_v34, %s3501_s3  ;;  %1146 = vrot.lane.b32.xlu0 %v982_v30, %s3501_s3  ;;  %v985_v26 = vmax.f32 %v759_v28, 0.0 }
 0x1b2   :  { %v3249_v14 = vpop.f32.mrf.mxu0 }
 0x1b3   :  { %v984_v20 = vmax.f32 %v754_v10, 0.0  ;;  %v769_v42 = vadd.f32 %v3249_v14, %v4129_v38 }
 0x1b4   :  { %v763_v44 = vpop.f32.mrf.mxu0 }
 0x1b5   :  { %v764_v22 = vadd.f32 %v4129_v38, %v763_v44  ;;  %1148 = vrot.lane.b32.xlu1 %v983_v16, %s3501_s3  ;;  %1150 = vrot.lane.b32.xlu0 %v984_v20, %s3501_s3  ;;  %v987_v18 = vmax.f32 %v769_v42, 0.0 }
 0x1b6   :  { %v3252_v40 = vpop.f32.mrf.mxu0 }
 0x1b7   :  { %v986_v36 = vmax.f32 %v764_v22, 0.0  ;;  %v779_v24 = vadd.f32 %v3252_v40, %v4129_v38 }
 0x1b8   :  { %v773_v34 = vpop.f32.mrf.mxu0 }
 0x1b9   :  { %v774_v30 = vadd.f32 %v4129_v38, %v773_v34  ;;  %1152 = vrot.lane.b32.xlu1 %v985_v26, %s3501_s3  ;;  %1154 = vrot.lane.b32.xlu0 %v986_v36, %s3501_s3  ;;  %v989_v28 = vmax.f32 %v779_v24, 0.0 }
 0x1ba   :  { %v3255_v10 = vpop.f32.mrf.mxu0 }
 0x1bb   :  { %v988_v44 = vmax.f32 %v774_v30, 0.0  ;;  %v789_v22 = vadd.f32 %v3255_v10, %v4129_v38 }
 0x1bc   :  { %v783_v16 = vpop.f32.mrf.mxu0 }
 0x1bd   :  { %v784_v20 = vadd.f32 %v4129_v38, %v783_v16  ;;  %1156 = vrot.lane.b32.xlu1 %v987_v18, %s3501_s3  ;;  %1158 = vrot.lane.b32.xlu0 %v988_v44, %s3501_s3  ;;  %v991_v42 = vmax.f32 %v789_v22, 0.0 }
 0x1be   :  { %v3258_v14 = vpop.f32.mrf.mxu0 }
 0x1bf   :  { %v990_v34 = vmax.f32 %v784_v20, 0.0  ;;  %v799_v30 = vadd.f32 %v3258_v14, %v4129_v38 }
 0x1c0   :  { %v793_v26 = vpop.f32.mrf.mxu0 }
 0x1c1   :  { %v794_v36 = vadd.f32 %v4129_v38, %v793_v26  ;;  %1160 = vrot.lane.b32.xlu1 %v989_v28, %s3501_s3  ;;  %1162 = vrot.lane.b32.xlu0 %v990_v34, %s3501_s3  ;;  %v993_v24 = vmax.f32 %v799_v30, 0.0 }
 0x1c2   :  { %v3261_v40 = vpop.f32.mrf.mxu0 }
 0x1c3   :  { %v992_v16 = vmax.f32 %v794_v36, 0.0  ;;  %v809_v20 = vadd.f32 %v3261_v40, %v4129_v38 }
 0x1c4   :  { %v803_v18 = vpop.f32.mrf.mxu0 }
 0x1c5   :  { %v804_v44 = vadd.f32 %v4129_v38, %v803_v18  ;;  %1164 = vrot.lane.b32.xlu1 %v991_v42, %s3501_s3  ;;  %1166 = vrot.lane.b32.xlu0 %v992_v16, %s3501_s3  ;;  %v995_v22 = vmax.f32 %v809_v20, 0.0 }
 0x1c6   :  { %v3264_v10 = vpop.f32.mrf.mxu0 }
 0x1c7   :  { %v994_v26 = vmax.f32 %v804_v44, 0.0  ;;  %v819_v36 = vadd.f32 %v3264_v10, %v4129_v38 }
 0x1c8   :  { %v813_v28 = vpop.f32.mrf.mxu0 }
 0x1c9   :  { %v814_v34 = vadd.f32 %v4129_v38, %v813_v28  ;;  %1168 = vrot.lane.b32.xlu1 %v993_v24, %s3501_s3  ;;  %1170 = vrot.lane.b32.xlu0 %v994_v26, %s3501_s3  ;;  %v997_v30 = vmax.f32 %v819_v36, 0.0 }
 0x1ca   :  { %v3267_v14 = vpop.f32.mrf.mxu0 }
 0x1cb   :  { %v996_v18 = vmax.f32 %v814_v34, 0.0  ;;  %v829_v44 = vadd.f32 %v3267_v14, %v4129_v38  ;;  %v244_v14 = vadd.f32 %v4129_v38, %v3892_v53  ;;  %v254_v53 = vadd.f32 %v4129_v38, %v3902_v57 }
 0x1cc   :  { %v823_v42 = vpop.f32.mrf.mxu0  ;;  %v259_v57 = vadd.f32 %v3897_v55, %v4129_v38 }
 0x1cd   :  { %v824_v16 = vadd.f32 %v4129_v38, %v823_v42  ;;  %1172 = vrot.lane.b32.xlu1 %v995_v22, %s3501_s3  ;;  %1174 = vrot.lane.b32.xlu0 %v996_v18, %s3501_s3  ;;  %v999_v20 = vmax.f32 %v829_v44, 0.0 }
 0x1ce   :  { %v3270_v40 = vpop.f32.mrf.mxu0 }
 0x1cf   :  { %v998_v28 = vmax.f32 %v824_v16, 0.0  ;;  %v839_v34 = vadd.f32 %v3270_v40, %v4129_v38  ;;  %v249_v40 = vadd.f32 %v3887_v51, %v4129_v38 }
 0x1d0   :  { %v833_v24 = vpop.f32.mrf.mxu0 }
 0x1d1   :  { %v834_v26 = vadd.f32 %v4129_v38, %v833_v24  ;;  %1176 = vrot.lane.b32.xlu1 %v997_v30, %s3501_s3  ;;  %1178 = vrot.lane.b32.xlu0 %v998_v28, %s3501_s3  ;;  %v1001_v16 = vmax.f32 %v839_v34, 0.0  ;;  %v883_v51 = vmax.f32 %v249_v40, 0.0 }
 0x1d2   :  { %v3273_v10 = vpop.f32.mrf.mxu0 }
 0x1d3   :  { %v1000_v42 = vmax.f32 %v834_v26, 0.0  ;;  %v849_v30 = vadd.f32 %v3273_v10, %v4129_v38  ;;  %v882_v26 = vmax.f32 %v244_v14, 0.0  ;;  %v884_v14 = vmax.f32 %v254_v53, 0.0 }
 0x1d4   :  { %v843_v22 = vpop.f32.mrf.mxu0  ;;  %v885_v53 = vmax.f32 %v259_v57, 0.0 }
 0x1d5   :  { %v844_v18 = vadd.f32 %v4129_v38, %v843_v22  ;;  %1180 = vrot.lane.b32.xlu1 %v999_v20, %s3501_s3  ;;  %1182 = vrot.lane.b32.xlu0 %v1000_v42, %s3501_s3  ;;  %v1003_v34 = vmax.f32 %v849_v30, 0.0 }
 0x1d6   :  { %v3276_v36 = vpop.f32.mrf.mxu0 }
 0x1d7   :  { %v1002_v28 = vmax.f32 %v844_v18, 0.0  ;;  %v859_v10 = vadd.f32 %v3276_v36, %v4129_v38  ;;  %v264_v36 = vadd.f32 %v4129_v38, %v3912_v61  ;;  %v1990_v61 = vld [vmem:[%s4919_s5 + $0x10] sm:$0xff] }
 0x1d8   :  { %v853_v24 = vpop.f32.mrf.mxu0 }
 0x1d9   :  { %v854_v44 = vadd.f32 %v4129_v38, %v853_v24  ;;  %1184 = vrot.lane.b32.xlu1 %v1001_v16, %s3501_s3  ;;  %1186 = vrot.lane.b32.xlu0 %v1002_v28, %s3501_s3  ;;  %v1005_v24 = vmax.f32 %v859_v10, 0.0  ;;  %v886_v10 = vmax.f32 %v264_v36, 0.0 }
 0x1da   :  { %v3279_v20 = vpop.f32.mrf.mxu0 }
 0x1db   :  { %v1004_v42 = vmax.f32 %v854_v44, 0.0  ;;  %v1075_v22 = vpop.permute.xlu0 %1074  ;;  %v869_v44 = vadd.f32 %v3279_v20, %v4129_v38  ;;  %v269_v20 = vadd.f32 %v3907_v59, %v4129_v38 }
 0x1dc   :  { %v863_v18 = vpop.f32.mrf.mxu0  ;;  %v1267_v16 = vsel %vm1266_vm0, %v882_v26, %v1075_v22 }
 0x1dd   :  { %v864_v28 = vadd.f32 %v4129_v38, %v863_v18  ;;  %1188 = vrot.lane.b32.xlu1 %v1003_v34, %s3501_s3  ;;  %1190 = vrot.lane.b32.xlu0 %v1004_v42, %s3501_s3  ;;  %v887_v36 = vmax.f32 %v269_v20, 0.0 }
 0x1de   :  { %3299 = vmatprep.mubr.msk.f32.mxu1 %vm1346_vm1, %v1267_v16  ;;  %v3282_v30 = vpop.f32.mrf.mxu0  ;;  %v274_v16 = vadd.f32 %v4129_v38, %v3922_v1  ;;  %v1989_v1 = vld [vmem:[%s4919_s5 + $0x8] sm:$0xff] }
 0x1df   :  { %v1006_v26 = vmax.f32 %v864_v28, 0.0  ;;  %v1079_v22 = vpop.permute.xlu1 %1078  ;;  %v1077_v18 = vpop.permute.xlu0 %1076  ;;  %v1007_v28 = vmax.f32 %v869_v44, 0.0 }
 0x1e0   :  { %v1269_v34 = vsel %vm1266_vm0, %v884_v14, %v1079_v22  ;;  %v1268_v40 = vsel %vm1266_vm0, %v883_v51, %v1077_v18  ;;  %v873_v42 = vpop.f32.mrf.mxu0  ;;  %v879_v51 = vadd.f32 %v3282_v30, %v4129_v38  ;;  %v279_v30 = vadd.f32 %v3917_v63, %v4129_v38 }
 0x1e1   :  { %v874_v55 = vadd.f32 %v4129_v38, %v873_v42  ;;  %1192 = vrot.lane.b32.xlu1 %v1005_v24, %s3501_s3  ;;  %1194 = vrot.lane.b32.xlu0 %v1006_v26, %s3501_s3  ;;  %v888_v44 = vmax.f32 %v274_v16, 0.0 }
 0x1e2   :  { %3300 = vmatmul.mubr.msk.f32.vlgmr.msra.gmra.mxu1 %vm1346_vm1, %v1268_v40  ;;  %v1009_v22 = vmax.f32 %v879_v51, 0.0  ;;  %v1988_v40 = vld [vmem:[%s4919_s5] sm:$0xff] }
 0x1e3   :  { %v1008_v14 = vmax.f32 %v874_v55, 0.0  ;;  %3302 = vmatprep.mubr.msk.f32.mxu1 %vm1346_vm1, %v1269_v34  ;;  %v1081_v24 = vpop.permute.xlu1 %1080  ;;  %v1083_v26 = vpop.permute.xlu0 %1082  ;;  %3396 = vmatpush3.msra.mxu1 %v4202_v32  ;;  %v284_v32 = vadd.f32 %v4129_v38, %v3932_v5  ;;  %v889_v5 = vmax.f32 %v279_v30, 0.0  ;;  %v289_v55 = vadd.f32 %v3927_v3, %v4129_v38 }
 0x1e4   :  { %v1270_v57 = vsel %vm1266_vm0, %v885_v53, %v1081_v24  ;;  %v1271_v59 = vsel %vm1266_vm0, %v886_v10, %v1083_v26  ;;  %3397 = vmatprep.subr.mxu1 %v1990_v61  ;;  %v299_v3 = vadd.f32 %v3937_v7, %v4129_v38  ;;  %v314_v7 = vadd.f32 %v4129_v38, %v3962_v17 }
 0x1e5   :  { %1196 = vrot.lane.b32.xlu1 %v1007_v28, %s3501_s3  ;;  %1198 = vrot.lane.b32.xlu0 %v1008_v14, %s3501_s3  ;;  %v890_v53 = vmax.f32 %v284_v32, 0.0  ;;  %v891_v51 = vmax.f32 %v289_v55, 0.0 }
 0x1e6   :  { %3303 = vmatmul.mubr.msk.f32.gmra.mxu1 %vm1346_vm1, %v1270_v57 }
 0x1e7   :  { %3305 = vmatprep.mubr.msk.f32.mxu1 %vm1346_vm1, %v1271_v59  ;;  %v1085_v18 = vpop.permute.xlu1 %1084  ;;  %v1087_v34 = vpop.permute.xlu0 %1086  ;;  %3398 = vmatpush3.msra.mxu1 %v1990_v61  ;;  %v294_v61 = vadd.f32 %v4129_v38, %v3942_v9  ;;  %v304_v9 = vadd.f32 %v4129_v38, %v3952_v13 }
 0x1e8   :  { %v1272_v42 = vsel %vm1266_vm0, %v887_v36, %v1085_v18  ;;  %v1273_v63 = vsel %vm1266_vm0, %v888_v44, %v1087_v34  ;;  %3399 = vmatprep.subr.mxu1 %v1989_v1  ;;  %v309_v36 = vadd.f32 %v3947_v11, %v4129_v38  ;;  %v319_v34 = vadd.f32 %v3957_v15, %v4129_v38 }
 0x1e9   :  { %1200 = vrot.lane.b32.xlu1 %v1009_v22, %s3501_s3  ;;  %3400 = vmatpush3.msra.mxu1 %v1989_v1  ;;  %v892_v14 = vmax.f32 %v294_v61, 0.0  ;;  %v893_v1 = vmax.f32 %v299_v3, 0.0  ;;  %v894_v30 = vmax.f32 %v304_v9, 0.0  ;;  %v324_v11 = vadd.f32 %v4129_v38, %v3972_v21 }
 0x1ea   :  { %3306 = vmatmul.mubr.msk.f32.gmra.mxu1 %vm1346_vm1, %v1272_v42  ;;  %3401 = vmatprep.subr.mxu1 %v1988_v40  ;;  %v895_v18 = vmax.f32 %v309_v36, 0.0  ;;  %v897_v55 = vmax.f32 %v319_v34, 0.0  ;;  %v334_v15 = vadd.f32 %v4129_v38, %v3982_v25 }
 0x1eb   :  { %3308 = vmatprep.mubr.msk.f32.mxu1 %vm1346_vm1, %v1273_v63  ;;  %v1089_v20 = vpop.permute.xlu1 %1088  ;;  %v1091_v10 = vpop.permute.xlu0 %1090  ;;  %3402 = vmatpush3.msra.mxu1 %v1988_v40  ;;  %v896_v40 = vmax.f32 %v314_v7, 0.0  ;;  %v898_v61 = vmax.f32 %v324_v11, 0.0 }
 0x1ec   :  { %v1274_v16 = vsel %vm1266_vm0, %v889_v5, %v1089_v20  ;;  %v1275_v28 = vsel %vm1266_vm0, %v890_v53, %v1091_v10  ;;  %v329_v53 = vadd.f32 %v3967_v19, %v4129_v38  ;;  %v900_v3 = vmax.f32 %v334_v15, 0.0 }
 0x1ed   :  { %v344_v19 = vadd.f32 %v4129_v38, %v3992_v29 }
 0x1ee   :  { %3309 = vmatmul.mubr.msk.f32.gmra.mxu1 %vm1346_vm1, %v1274_v16 }
 0x1ef   :  { %3311 = vmatprep.mubr.msk.f32.mxu1 %vm1346_vm1, %v1275_v28  ;;  %v1093_v24 = vpop.permute.xlu1 %1092  ;;  %v1095_v26 = vpop.permute.xlu0 %1094  ;;  %v899_v28 = vmax.f32 %v329_v53, 0.0 }
 0x1f0   :  { %v1276_v57 = vsel %vm1266_vm0, %v891_v51, %v1093_v24  ;;  %v1277_v59 = vsel %vm1266_vm0, %v892_v14, %v1095_v26  ;;  %v339_v51 = vadd.f32 %v3977_v23, %v4129_v38  ;;  %v354_v23 = vadd.f32 %v4129_v38, %v4002_v33 }
 0x1f2   :  { %3312 = vmatmul.mubr.msk.f32.gmra.mxu1 %vm1346_vm1, %v1276_v57  ;;  %v901_v26 = vmax.f32 %v339_v51, 0.0  ;;  %v349_v57 = vadd.f32 %v3987_v27, %v4129_v38  ;;  %v364_v27 = vadd.f32 %v4129_v38, %v4012_v37 }
 0x1f3   :  { %3314 = vmatprep.mubr.msk.f32.mxu1 %vm1346_vm1, %v1277_v59  ;;  %v1097_v13 = vpop.permute.xlu1 %1096  ;;  %v1099_v44 = vpop.permute.xlu0 %1098  ;;  %v902_v59 = vmax.f32 %v344_v19, 0.0 }
 0x1f4   :  { %v1278_v32 = vsel %vm1266_vm0, %v893_v1, %v1097_v13  ;;  %v1279_v22 = vsel %vm1266_vm0, %v894_v30, %v1099_v44  ;;  %v903_v7 = vmax.f32 %v349_v57, 0.0  ;;  %v359_v13 = vadd.f32 %v3997_v31, %v4129_v38 }
 0x1f5   :  { %v904_v44 = vmax.f32 %v354_v23, 0.0  ;;  %v906_v11 = vmax.f32 %v364_v27, 0.0  ;;  %v374_v31 = vadd.f32 %v4129_v38, %v4022_v41 }
 0x1f6   :  { %3315 = vmatmul.mubr.msk.f32.gmra.mxu1 %vm1346_vm1, %v1278_v32  ;;  %v905_v34 = vmax.f32 %v359_v13, 0.0 }
 0x1f7   :  { %3317 = vmatprep.mubr.msk.f32.mxu1 %vm1346_vm1, %v1279_v22  ;;  %v1101_v17 = vpop.permute.xlu1 %1100  ;;  %v1103_v42 = vpop.permute.xlu0 %1102  ;;  %v908_v53 = vmax.f32 %v374_v31, 0.0 }
 0x1f8   :  { %v1280_v63 = vsel %vm1266_vm0, %v895_v18, %v1101_v17  ;;  %v1281_v5 = vsel %vm1266_vm0, %v896_v40, %v1103_v42  ;;  %v369_v40 = vadd.f32 %v4007_v35, %v4129_v38  ;;  %v384_v35 = vadd.f32 %v4129_v38, %v4032_v45 }
 0x1fa   :  { %3318 = vmatmul.mubr.msk.f32.gmra.mxu1 %vm1346_vm1, %v1280_v63 }
 0x1fb   :  { %3320 = vmatprep.mubr.msk.f32.mxu1 %vm1346_vm1, %v1281_v5  ;;  %v1105_v21 = vpop.permute.xlu1 %1104  ;;  %v1107_v20 = vpop.permute.xlu0 %1106  ;;  %v907_v5 = vmax.f32 %v369_v40, 0.0 }
 0x1fc   :  { %v1282_v10 = vsel %vm1266_vm0, %v897_v55, %v1105_v21  ;;  %v1283_v16 = vsel %vm1266_vm0, %v898_v61, %v1107_v20  ;;  %v379_v55 = vadd.f32 %v4017_v39, %v4129_v38  ;;  %v394_v39 = vadd.f32 %v4129_v38, %v4036_v47 }
 0x1fe   :  { %3321 = vmatmul.mubr.msk.f32.gmra.mxu1 %vm1346_vm1, %v1282_v10  ;;  %v909_v20 = vmax.f32 %v379_v55, 0.0  ;;  %v389_v10 = vadd.f32 %v4027_v43, %v4129_v38  ;;  %v404_v43 = vadd.f32 %v4129_v38, %v4040_v49 }
 0x1ff   :  { %3323 = vmatprep.mubr.msk.f32.mxu1 %vm1346_vm1, %v1283_v16  ;;  %v1109_v25 = vpop.permute.xlu1 %1108  ;;  %v1111_v14 = vpop.permute.xlu0 %1110  ;;  %v910_v16 = vmax.f32 %v384_v35, 0.0 }
 0x200   :  { %v1284_v9 = vsel %vm1266_vm0, %v899_v28, %v1109_v25  ;;  %v1285_v24 = vsel %vm1266_vm0, %v900_v3, %v1111_v14  ;;  %v911_v19 = vmax.f32 %v389_v10, 0.0  ;;  %v399_v25 = vadd.f32 %v4034_v46, %v4129_v38 }
 0x201   :  { %v912_v14 = vmax.f32 %v394_v39, 0.0  ;;  %v914_v23 = vmax.f32 %v404_v43, 0.0  ;;  %v414_v46 = vadd.f32 %v4129_v38, %v4044_v52 }
 0x202   :  { %3324 = vmatmul.mubr.msk.f32.gmra.mxu1 %vm1346_vm1, %v1284_v9  ;;  %v913_v57 = vmax.f32 %v399_v25, 0.0 }
 0x203   :  { %3326 = vmatprep.mubr.msk.f32.mxu1 %vm1346_vm1, %v1285_v24  ;;  %v1113_v29 = vpop.permute.xlu1 %1112  ;;  %v1115_v1 = vpop.permute.xlu0 %1114  ;;  %v916_v13 = vmax.f32 %v414_v46, 0.0 }
 0x204   :  { %v1286_v36 = vsel %vm1266_vm0, %v901_v26, %v1113_v29  ;;  %v1287_v30 = vsel %vm1266_vm0, %v902_v59, %v1115_v1  ;;  %v409_v59 = vadd.f32 %v4038_v48, %v4129_v38  ;;  %v424_v48 = vadd.f32 %v4129_v38, %v4048_v56 }
 0x206   :  { %3327 = vmatmul.mubr.msk.f32.gmra.mxu1 %vm1346_vm1, %v1286_v36 }
 0x207   :  { %3329 = vmatprep.mubr.msk.f32.mxu1 %vm1346_vm1, %v1287_v30  ;;  %v1117_v33 = vpop.permute.xlu1 %1116  ;;  %v1119_v32 = vpop.permute.xlu0 %1118  ;;  %v915_v30 = vmax.f32 %v409_v59, 0.0 }
 0x208   :  { %v1288_v22 = vsel %vm1266_vm0, %v903_v7, %v1117_v33  ;;  %v1289_v18 = vsel %vm1266_vm0, %v904_v44, %v1119_v32  ;;  %v419_v7 = vadd.f32 %v4042_v50, %v4129_v38  ;;  %v434_v50 = vadd.f32 %v4129_v38, %v4052_v60 }
 0x20a   :  { %3330 = vmatmul.mubr.msk.f32.gmra.mxu1 %vm1346_vm1, %v1288_v22  ;;  %v917_v32 = vmax.f32 %v419_v7, 0.0  ;;  %v429_v22 = vadd.f32 %v4046_v54, %v4129_v38  ;;  %v444_v54 = vadd.f32 %v4129_v38, %v4056_v0 }
 0x20b   :  { %3332 = vmatprep.mubr.msk.f32.mxu1 %vm1346_vm1, %v1289_v18  ;;  %v1121_v37 = vpop.permute.xlu1 %1120  ;;  %v1123_v17 = vpop.permute.xlu0 %1122  ;;  %v918_v18 = vmax.f32 %v424_v48, 0.0 }
 0x20c   :  { %v1290_v42 = vsel %vm1266_vm0, %v905_v34, %v1121_v37  ;;  %v1291_v63 = vsel %vm1266_vm0, %v906_v11, %v1123_v17  ;;  %v919_v31 = vmax.f32 %v429_v22, 0.0  ;;  %v439_v37 = vadd.f32 %v4050_v58, %v4129_v38 }
 0x20d   :  { %v920_v17 = vmax.f32 %v434_v50, 0.0  ;;  %v922_v35 = vmax.f32 %v444_v54, 0.0  ;;  %v454_v58 = vadd.f32 %v4129_v38, %v4060_v4  ;;  %v4947_v54 = vld [vmem:[#allocation10_spill] sm:$0xff] }
 0x20e   :  { %3333 = vmatmul.mubr.msk.f32.gmra.mxu1 %vm1346_vm1, %v1290_v42  ;;  %v921_v55 = vmax.f32 %v439_v37, 0.0 }
 0x20f   :  { %3335 = vmatprep.mubr.msk.f32.mxu1 %vm1346_vm1, %v1291_v63  ;;  %v1125_v41 = vpop.permute.xlu1 %1124  ;;  %v1127_v61 = vpop.permute.xlu0 %1126  ;;  %v924_v10 = vmax.f32 %v454_v58, 0.0 }
 0x210   :  { %v1292_v15 = vsel %vm1266_vm0, %v907_v5, %v1125_v41  ;;  %v1293_v21 = vsel %vm1266_vm0, %v908_v53, %v1127_v61  ;;  %v449_v53 = vadd.f32 %v4054_v62, %v4129_v38  ;;  %v464_v62 = vadd.f32 %v4129_v38, %v4064_v8 }
 0x212   :  { %3336 = vmatmul.mubr.msk.f32.gmra.mxu1 %vm1346_vm1, %v1292_v15 }
 0x213   :  { %3338 = vmatprep.mubr.msk.f32.mxu1 %vm1346_vm1, %v1293_v21  ;;  %v1129_v45 = vpop.permute.xlu1 %1128  ;;  %v1131_v28 = vpop.permute.xlu0 %1130  ;;  %v923_v21 = vmax.f32 %v449_v53, 0.0 }
 0x214   :  { %v1294_v51 = vsel %vm1266_vm0, %v909_v20, %v1129_v45  ;;  %v1295_v3 = vsel %vm1266_vm0, %v910_v16, %v1131_v28  ;;  %v459_v20 = vadd.f32 %v4058_v2, %v4129_v38  ;;  %v474_v2 = vadd.f32 %v4129_v38, %v4068_v12 }
 0x216   :  { %3339 = vmatmul.mubr.msk.f32.gmra.mxu1 %vm1346_vm1, %v1294_v51  ;;  %v925_v28 = vmax.f32 %v459_v20, 0.0  ;;  %v469_v51 = vadd.f32 %v4062_v6, %v4129_v38  ;;  %v4941_v6 = vld [vmem:[#allocation4_spill] sm:$0xff] }
 0x217   :  { %3341 = vmatprep.mubr.msk.f32.mxu1 %vm1346_vm1, %v1295_v3  ;;  %v1133_v47 = vpop.permute.xlu1 %1132  ;;  %v1135_v9 = vpop.permute.xlu0 %1134  ;;  %v926_v3 = vmax.f32 %v464_v62, 0.0 }
 0x218   :  { %v1296_v24 = vsel %vm1266_vm0, %v911_v19, %v1133_v47  ;;  %v1297_v26 = vsel %vm1266_vm0, %v912_v14, %v1135_v9  ;;  %v927_v43 = vmax.f32 %v469_v51, 0.0  ;;  %v4940_v47 = vld [vmem:[#allocation2_spill] sm:$0xff] }
 0x219   :  { %v479_v9 = vadd.f32 %v4940_v47, %v4129_v38  ;;  %v4953_v47 = vld [vmem:[#allocation16_spill] sm:$0xff] }
 0x21a   :  { %3342 = vmatmul.mubr.msk.f32.gmra.mxu1 %vm1346_vm1, %v1296_v24  ;;  %v928_v24 = vmax.f32 %v474_v2, 0.0 }
 0x21b   :  { %3344 = vmatprep.mubr.msk.f32.mxu1 %vm1346_vm1, %v1297_v26  ;;  %v1137_v49 = vpop.permute.xlu1 %1136  ;;  %v1139_v29 = vpop.permute.xlu0 %1138  ;;  %v484_v26 = vadd.f32 %v4129_v38, %v4941_v6  ;;  %v929_v46 = vmax.f32 %v479_v9, 0.0 }
 0x21c   :  { %v1298_v1 = vsel %vm1266_vm0, %v913_v57, %v1137_v49  ;;  %v1299_v36 = vsel %vm1266_vm0, %v914_v23, %v1139_v29  ;;  %v4942_v49 = vld [vmem:[#allocation3_spill] sm:$0xff] }
 0x21d   :  { %v489_v29 = vadd.f32 %v4942_v49, %v4129_v38  ;;  %v4955_v49 = vld [vmem:[#allocation18_spill] sm:$0xff] }
 0x21e   :  { %3345 = vmatmul.mubr.msk.f32.gmra.mxu1 %vm1346_vm1, %v1298_v1  ;;  %v930_v1 = vmax.f32 %v484_v26, 0.0 }
 0x21f   :  { %3347 = vmatprep.mubr.msk.f32.mxu1 %vm1346_vm1, %v1299_v36  ;;  %v1141_v52 = vpop.permute.xlu1 %1140  ;;  %v1143_v44 = vpop.permute.xlu0 %1142  ;;  %v4943_v36 = vld [vmem:[#allocation6_spill] sm:$0xff] }
 0x220   :  { %v1300_v27 = vsel %vm1266_vm0, %v915_v30, %v1141_v52  ;;  %v1301_v33 = vsel %vm1266_vm0, %v916_v13, %v1143_v44  ;;  %v494_v30 = vadd.f32 %v4129_v38, %v4943_v36  ;;  %v931_v44 = vmax.f32 %v489_v29, 0.0 }
 0x222   :  { %3348 = vmatmul.mubr.msk.f32.gmra.mxu1 %vm1346_vm1, %v1300_v27  ;;  %v3500_v27 = vld [vmem:[%s4918_s2] ss:$0 sm:$0xff]  ;;  %v932_v22 = vmax.f32 %v494_v30, 0.0 }
 0x223   :  { %3350 = vmatprep.mubr.msk.f32.mxu1 %vm1346_vm1, %v1301_v33  ;;  %v1145_v56 = vpop.permute.xlu1 %1144  ;;  %v1147_v34 = vpop.permute.xlu0 %1146  ;;  %v4944_v33 = vld [vmem:[#allocation5_spill] sm:$0xff]  ;;  %v544_v9 = vadd.f32 %v3500_v27, %v4953_v47  ;;  %v554_v29 = vadd.f32 %v3500_v27, %v4955_v49 }
 0x224   :  { %v1302_v40 = vsel %vm1266_vm0, %v917_v32, %v1145_v56  ;;  %v1303_v11 = vsel %vm1266_vm0, %v918_v18, %v1147_v34  ;;  %v499_v32 = vadd.f32 %v3500_v27, %v4944_v33  ;;  %v4945_v18 = vld [vmem:[#allocation8_spill] sm:$0xff] }
 0x225   :  { %v504_v38 = vadd.f32 %v3500_v27, %v4945_v18 }
 0x226   :  { %3351 = vmatmul.mubr.msk.f32.gmra.mxu1 %vm1346_vm1, %v1302_v40 }
 0x227   :  { %3353 = vmatprep.mubr.msk.f32.mxu1 %vm1346_vm1, %v1303_v11  ;;  %v1149_v60 = vpop.permute.xlu1 %1148  ;;  %v1151_v42 = vpop.permute.xlu0 %1150  ;;  %v933_v11 = vmax.f32 %v499_v32, 0.0 }
 0x228   :  { %v1304_v63 = vsel %vm1266_vm0, %v919_v31, %v1149_v60  ;;  %v1305_v5 = vsel %vm1266_vm0, %v920_v17, %v1151_v42  ;;  %v4946_v31 = vld [vmem:[#allocation7_spill] sm:$0xff]  ;;  %v934_v17 = vmax.f32 %v504_v38, 0.0  ;;  %v514_v60 = vadd.f32 %v3500_v27, %v4947_v54 }
 0x229   :  { %v509_v37 = vadd.f32 %v3500_v27, %v4946_v31 }
 0x22a   :  { %3354 = vmatmul.mubr.msk.f32.gmra.mxu1 %vm1346_vm1, %v1304_v63 }
 0x22b   :  { %3356 = vmatprep.mubr.msk.f32.mxu1 %vm1346_vm1, %v1305_v5  ;;  %v1153_v0 = vpop.permute.xlu1 %1152  ;;  %v1155_v41 = vpop.permute.xlu0 %1154  ;;  %v935_v53 = vmax.f32 %v509_v37, 0.0 }
 0x22c   :  { %v1306_v61 = vsel %vm1266_vm0, %v921_v55, %v1153_v0  ;;  %v1307_v15 = vsel %vm1266_vm0, %v922_v35, %v1155_v41  ;;  %v4948_v35 = vld [vmem:[#allocation9_spill] sm:$0xff]  ;;  %v936_v0 = vmax.f32 %v514_v60, 0.0  ;;  %v4949_v41 = vld [vmem:[#allocation12_spill] sm:$0xff] }
 0x22d   :  { %v519_v58 = vadd.f32 %v3500_v27, %v4948_v35 }
 0x22e   :  { %3357 = vmatmul.mubr.msk.f32.gmra.mxu1 %vm1346_vm1, %v1306_v61  ;;  %v524_v61 = vadd.f32 %v3500_v27, %v4949_v41 }
 0x22f   :  { %3359 = vmatprep.mubr.msk.f32.mxu1 %vm1346_vm1, %v1307_v15  ;;  %v1157_v4 = vpop.permute.xlu1 %1156  ;;  %v1159_v16 = vpop.permute.xlu0 %1158  ;;  %v937_v62 = vmax.f32 %v519_v58, 0.0 }
 0x230   :  { %v1308_v39 = vsel %vm1266_vm0, %v923_v21, %v1157_v4  ;;  %v1309_v45 = vsel %vm1266_vm0, %v924_v10, %v1159_v16  ;;  %v4950_v4 = vld [vmem:[#allocation11_spill] sm:$0xff] }
 0x231   :  { %v529_v16 = vadd.f32 %v3500_v27, %v4950_v4 }
 0x232   :  { %3360 = vmatmul.mubr.msk.f32.gmra.mxu1 %vm1346_vm1, %v1308_v39  ;;  %v938_v39 = vmax.f32 %v524_v61, 0.0 }
 0x233   :  { %3362 = vmatprep.mubr.msk.f32.mxu1 %vm1346_vm1, %v1309_v45  ;;  %v1161_v8 = vpop.permute.xlu1 %1160  ;;  %v1163_v19 = vpop.permute.xlu0 %1162  ;;  %v4951_v45 = vld [vmem:[#allocation14_spill] sm:$0xff] }
 0x234   :  { %v1310_v25 = vsel %vm1266_vm0, %v925_v28, %v1161_v8  ;;  %v1311_v14 = vsel %vm1266_vm0, %v926_v3, %v1163_v19  ;;  %v534_v28 = vadd.f32 %v3500_v27, %v4951_v45  ;;  %v939_v19 = vmax.f32 %v529_v16, 0.0 }
 0x236   :  { %3363 = vmatmul.mubr.msk.f32.gmra.mxu1 %vm1346_vm1, %v1310_v25  ;;  %v4952_v25 = vld [vmem:[#allocation13_spill] sm:$0xff] }
 0x237   :  { %3365 = vmatprep.mubr.msk.f32.mxu1 %vm1346_vm1, %v1311_v14  ;;  %v1165_v12 = vpop.permute.xlu1 %1164  ;;  %v1167_v57 = vpop.permute.xlu0 %1166  ;;  %v539_v14 = vadd.f32 %v3500_v27, %v4952_v25 }
 0x238   :  { %v1312_v59 = vsel %vm1266_vm0, %v927_v43, %v1165_v12  ;;  %v1313_v23 = vsel %vm1266_vm0, %v928_v24, %v1167_v57  ;;  %v940_v43 = vmax.f32 %v534_v28, 0.0 }
 0x239   :  { %v941_v57 = vmax.f32 %v539_v14, 0.0 }
 0x23a   :  { %3366 = vmatmul.mubr.msk.f32.gmra.mxu1 %vm1346_vm1, %v1312_v59  ;;  %v4954_v59 = vld [vmem:[#allocation15_spill] sm:$0xff] }
 0x23b   :  { %3368 = vmatprep.mubr.msk.f32.mxu1 %vm1346_vm1, %v1313_v23  ;;  %v1169_v7 = vpop.permute.xlu1 %1168  ;;  %v1171_v13 = vpop.permute.xlu0 %1170  ;;  %v549_v23 = vadd.f32 %v3500_v27, %v4954_v59 }
 0x23c   :  { %v1314_v48 = vsel %vm1266_vm0, %v929_v46, %v1169_v7  ;;  %v1315_v52 = vsel %vm1266_vm0, %v930_v1, %v1171_v13  ;;  %v942_v46 = vmax.f32 %v544_v9, 0.0 }
 0x23d   :  { %v943_v13 = vmax.f32 %v549_v23, 0.0 }
 0x23e   :  { %3369 = vmatmul.mubr.msk.f32.gmra.mxu1 %vm1346_vm1, %v1314_v48  ;;  %v4956_v48 = vld [vmem:[#allocation17_spill] sm:$0xff] }
 0x23f   :  { %3371 = vmatprep.mubr.msk.f32.mxu1 %vm1346_vm1, %v1315_v52  ;;  %v1173_v50 = vpop.permute.xlu1 %1172  ;;  %v1175_v56 = vpop.permute.xlu0 %1174  ;;  %v559_v52 = vadd.f32 %v3500_v27, %v4956_v48  ;;  %v4524_v27 = vld [vmem:[%s4920_s4] ss:$0 sm:$0xff] }
 0x240   :  { %v1316_v34 = vsel %vm1266_vm0, %v931_v44, %v1173_v50  ;;  %v1317_v40 = vsel %vm1266_vm0, %v932_v22, %v1175_v56  ;;  %v944_v44 = vmax.f32 %v554_v29, 0.0 }
 0x241   :  { %v945_v38 = vmax.f32 %v559_v52, 0.0 }
 0x242   :  { %3372 = vmatmul.mubr.msk.f32.gmra.mxu1 %vm1346_vm1, %v1316_v34 }
 0x243   :  { %3374 = vmatprep.mubr.msk.f32.mxu1 %vm1346_vm1, %v1317_v40  ;;  %v1177_v42 = vpop.permute.xlu1 %1176  ;;  %v1179_v63 = vpop.permute.xlu0 %1178 }
 0x244   :  { %v1318_v5 = vsel %vm1266_vm0, %v933_v11, %v1177_v42  ;;  %v1319_v55 = vsel %vm1266_vm0, %v934_v17, %v1179_v63 }
 0x246   :  { %3375 = vmatmul.mubr.msk.f32.gmra.mxu1 %vm1346_vm1, %v1318_v5 }
 0x247   :  { %3377 = vmatprep.mubr.msk.f32.mxu1 %vm1346_vm1, %v1319_v55  ;;  %v1181_v15 = vpop.permute.xlu1 %1180  ;;  %v1183_v21 = vpop.permute.xlu0 %1182 }
 0x248   :  { %v1320_v20 = vsel %vm1266_vm0, %v935_v53, %v1181_v15  ;;  %v1321_v10 = vsel %vm1266_vm0, %v936_v0, %v1183_v21 }
 0x24a   :  { %3378 = vmatmul.mubr.msk.f32.gmra.mxu1 %vm1346_vm1, %v1320_v20 }
 0x24b   :  { %3380 = vmatprep.mubr.msk.f32.mxu1 %vm1346_vm1, %v1321_v10  ;;  %v1185_v51 = vpop.permute.xlu1 %1184  ;;  %v1187_v3 = vpop.permute.xlu0 %1186 }
 0x24c   :  { %v1322_v2 = vsel %vm1266_vm0, %v937_v62, %v1185_v51  ;;  %v1323_v8 = vsel %vm1266_vm0, %v938_v39, %v1187_v3 }
 0x24e   :  { %3381 = vmatmul.mubr.msk.f32.gmra.mxu1 %vm1346_vm1, %v1322_v2 }
 0x24f   :  { %3383 = vmatprep.mubr.msk.f32.mxu1 %vm1346_vm1, %v1323_v8  ;;  %v1189_v24 = vpop.permute.xlu1 %1188  ;;  %v1191_v6 = vpop.permute.xlu0 %1190 }
 0x250   :  { %v1324_v26 = vsel %vm1266_vm0, %v939_v19, %v1189_v24  ;;  %v1325_v12 = vsel %vm1266_vm0, %v940_v43, %v1191_v6 }
 0x252   :  { %3384 = vmatmul.mubr.msk.f32.gmra.mxu1 %vm1346_vm1, %v1324_v26 }
 0x253   :  { %3386 = vmatprep.mubr.msk.f32.mxu1 %vm1346_vm1, %v1325_v12  ;;  %v1193_v1 = vpop.permute.xlu1 %1192  ;;  %v1195_v36 = vpop.permute.xlu0 %1194 }
 0x254   :  { %v1326_v30 = vsel %vm1266_vm0, %v941_v57, %v1193_v1  ;;  %v1327_v7 = vsel %vm1266_vm0, %v942_v46, %v1195_v36 }
 0x256   :  { %3387 = vmatmul.mubr.msk.f32.gmra.mxu1 %vm1346_vm1, %v1326_v30 }
 0x257   :  { %3389 = vmatprep.mubr.msk.f32.mxu1 %vm1346_vm1, %v1327_v7  ;;  %v1197_v33 = vpop.permute.xlu1 %1196  ;;  %v1199_v32 = vpop.permute.xlu0 %1198 }
 0x258   :  { %v1328_v22 = vsel %vm1266_vm0, %v943_v13, %v1197_v33  ;;  %v1329_v18 = vsel %vm1266_vm0, %v944_v44, %v1199_v32 }
 0x25a   :  { %3390 = vmatmul.mubr.msk.f32.gmra.mxu1 %vm1346_vm1, %v1328_v22 }
 0x25b   :  { %3392 = vmatprep.mubr.msk.f32.mxu1 %vm1346_vm1, %v1329_v18  ;;  %v1201_v50 = vpop.permute.xlu1 %1200 }
 0x25c   :  { %v1330_v56 = vsel %vm1266_vm0, %v945_v38, %v1201_v50 }
 0x25e   :  { %3393 = vmatmul.mubr.msk.f32.gmra.mxu1 %vm1346_vm1, %v1330_v56 }
 0x2a2   :  { %v3301_v34 = vpop.f32.mrf.mxu1 }
 0x2a3   :  { %v1611_v40 = vadd.f32 %v3301_v34, %v4524_v27 }
 0x2a4   :  { %v1605_v11 = vpop.f32.mrf.mxu1 }
 0x2a5   :  { %v1606_v31 = vadd.f32 %v4524_v27, %v1605_v11  ;;  %v1925_v54 = vmax.f32 %v1611_v40, 0.0 }
 0x2a6   :  { %v3304_v37 = vpop.f32.mrf.mxu1 }
 0x2a7   :  { %v1924_v17 = vmax.f32 %v1606_v31, 0.0  ;;  %v1621_v60 = vadd.f32 %v3304_v37, %v4524_v27 }
 0x2a8   :  { %v1615_v42 = vpop.f32.mrf.mxu1 }
 0x2a9   :  { %v1616_v63 = vadd.f32 %v4524_v27, %v1615_v42  ;;  %3403 = vmatprep.mubr.msk.f32.mxu1 %vm1266_vm0, %v1924_v17  ;;  %v1927_v53 = vmax.f32 %v1621_v60, 0.0 }
 0x2aa   :  { %v3307_v5 = vpop.f32.mrf.mxu1  ;;  %3404 = vmatmul.mubr.msk.f32.vlgmr.msra.gmra.mxu1 %vm1266_vm0, %v1925_v54 }
 0x2ab   :  { %v1926_v55 = vmax.f32 %v1616_v63, 0.0  ;;  %v1631_v35 = vadd.f32 %v3307_v5, %v4524_v27 }
 0x2ac   :  { %v1625_v58 = vpop.f32.mrf.mxu1 }
 0x2ad   :  { %v1626_v0 = vadd.f32 %v4524_v27, %v1625_v58  ;;  %3406 = vmatprep.mubr.msk.f32.mxu1 %vm1266_vm0, %v1926_v55  ;;  %v1929_v15 = vmax.f32 %v1631_v35, 0.0 }
 0x2ae   :  { %v3310_v41 = vpop.f32.mrf.mxu1  ;;  %3407 = vmatmul.mubr.msk.f32.gmra.mxu1 %vm1266_vm0, %v1927_v53 }
 0x2af   :  { %v1928_v61 = vmax.f32 %v1626_v0, 0.0  ;;  %v1641_v21 = vadd.f32 %v3310_v41, %v4524_v27 }
 0x2b0   :  { %v1635_v20 = vpop.f32.mrf.mxu1 }
 0x2b1   :  { %v1636_v10 = vadd.f32 %v4524_v27, %v1635_v20  ;;  %3409 = vmatprep.mubr.msk.f32.mxu1 %vm1266_vm0, %v1928_v61  ;;  %v1931_v16 = vmax.f32 %v1641_v21, 0.0 }
 0x2b2   :  { %v3313_v62 = vpop.f32.mrf.mxu1  ;;  %3410 = vmatmul.mubr.msk.f32.gmra.mxu1 %vm1266_vm0, %v1929_v15 }
 0x2b3   :  { %v1930_v4 = vmax.f32 %v1636_v10, 0.0  ;;  %v1651_v39 = vadd.f32 %v3313_v62, %v4524_v27 }
 0x2b4   :  { %v1645_v45 = vpop.f32.mrf.mxu1 }
 0x2b5   :  { %v1646_v28 = vadd.f32 %v4524_v27, %v1645_v45  ;;  %3412 = vmatprep.mubr.msk.f32.mxu1 %vm1266_vm0, %v1930_v4  ;;  %v1933_v2 = vmax.f32 %v1651_v39, 0.0 }
 0x2b6   :  { %v3316_v51 = vpop.f32.mrf.mxu1  ;;  %3413 = vmatmul.mubr.msk.f32.gmra.mxu1 %vm1266_vm0, %v1931_v16 }
 0x2b7   :  { %v1932_v3 = vmax.f32 %v1646_v28, 0.0  ;;  %v1661_v8 = vadd.f32 %v3316_v51, %v4524_v27 }
 0x2b8   :  { %v1655_v19 = vpop.f32.mrf.mxu1 }
 0x2b9   :  { %v1656_v25 = vadd.f32 %v4524_v27, %v1655_v19  ;;  %3415 = vmatprep.mubr.msk.f32.mxu1 %vm1266_vm0, %v1932_v3  ;;  %v1935_v47 = vmax.f32 %v1661_v8, 0.0 }
 0x2ba   :  { %v3319_v14 = vpop.f32.mrf.mxu1  ;;  %3416 = vmatmul.mubr.msk.f32.gmra.mxu1 %vm1266_vm0, %v1933_v2 }
 0x2bb   :  { %v1934_v43 = vmax.f32 %v1656_v25, 0.0  ;;  %v1671_v9 = vadd.f32 %v3319_v14, %v4524_v27 }
 0x2bc   :  { %v1665_v24 = vpop.f32.mrf.mxu1 }
 0x2bd   :  { %v1666_v6 = vadd.f32 %v4524_v27, %v1665_v24  ;;  %3418 = vmatprep.mubr.msk.f32.mxu1 %vm1266_vm0, %v1934_v43  ;;  %v1937_v57 = vmax.f32 %v1671_v9, 0.0 }
 0x2be   :  { %v3322_v26 = vpop.f32.mrf.mxu1  ;;  %3419 = vmatmul.mubr.msk.f32.gmra.mxu1 %vm1266_vm0, %v1935_v47 }
 0x2bf   :  { %v1936_v12 = vmax.f32 %v1666_v6, 0.0  ;;  %v1681_v59 = vadd.f32 %v3322_v26, %v4524_v27 }
 0x2c0   :  { %v1675_v23 = vpop.f32.mrf.mxu1 }
 0x2c1   :  { %v1676_v46 = vadd.f32 %v4524_v27, %v1675_v23  ;;  %3421 = vmatprep.mubr.msk.f32.mxu1 %vm1266_vm0, %v1936_v12  ;;  %v1939_v1 = vmax.f32 %v1681_v59, 0.0 }
 0x2c2   :  { %v3325_v49 = vpop.f32.mrf.mxu1  ;;  %3422 = vmatmul.mubr.msk.f32.gmra.mxu1 %vm1266_vm0, %v1937_v57 }
 0x2c3   :  { %v1938_v29 = vmax.f32 %v1676_v46, 0.0  ;;  %v1691_v36 = vadd.f32 %v3325_v49, %v4524_v27 }
 0x2c4   :  { %v1685_v30 = vpop.f32.mrf.mxu1 }
 0x2c5   :  { %v1686_v7 = vadd.f32 %v4524_v27, %v1685_v30  ;;  %3424 = vmatprep.mubr.msk.f32.mxu1 %vm1266_vm0, %v1938_v29  ;;  %v1941_v52 = vmax.f32 %v1691_v36, 0.0 }
 0x2c6   :  { %v3328_v13 = vpop.f32.mrf.mxu1  ;;  %3425 = vmatmul.mubr.msk.f32.gmra.mxu1 %vm1266_vm0, %v1939_v1 }
 0x2c7   :  { %v1940_v48 = vmax.f32 %v1686_v7, 0.0  ;;  %v1701_v44 = vadd.f32 %v3328_v13, %v4524_v27 }
 0x2c8   :  { %v1695_v33 = vpop.f32.mrf.mxu1 }
 0x2c9   :  { %v1696_v32 = vadd.f32 %v4524_v27, %v1695_v33  ;;  %3427 = vmatprep.mubr.msk.f32.mxu1 %vm1266_vm0, %v1940_v48  ;;  %v1943_v38 = vmax.f32 %v1701_v44, 0.0 }
 0x2ca   :  { %v3331_v22 = vpop.f32.mrf.mxu1  ;;  %3428 = vmatmul.mubr.msk.f32.gmra.mxu1 %vm1266_vm0, %v1941_v52 }
 0x2cb   :  { %v1942_v18 = vmax.f32 %v1696_v32, 0.0  ;;  %v1711_v50 = vadd.f32 %v3331_v22, %v4524_v27 }
 0x2cc   :  { %v1705_v56 = vpop.f32.mrf.mxu1 }
 0x2cd   :  { %v1706_v34 = vadd.f32 %v4524_v27, %v1705_v56  ;;  %3430 = vmatprep.mubr.msk.f32.mxu1 %vm1266_vm0, %v1942_v18  ;;  %v1945_v31 = vmax.f32 %v1711_v50, 0.0 }
 0x2ce   :  { %v3334_v40 = vpop.f32.mrf.mxu1  ;;  %3431 = vmatmul.mubr.msk.f32.gmra.mxu1 %vm1266_vm0, %v1943_v38 }
 0x2cf   :  { %v1944_v11 = vmax.f32 %v1706_v34, 0.0  ;;  %v1721_v37 = vadd.f32 %v3334_v40, %v4524_v27 }
 0x2d0   :  { %v1715_v17 = vpop.f32.mrf.mxu1 }
 0x2d1   :  { %v1716_v54 = vadd.f32 %v4524_v27, %v1715_v17  ;;  %3433 = vmatprep.mubr.msk.f32.mxu1 %vm1266_vm0, %v1944_v11  ;;  %v1947_v63 = vmax.f32 %v1721_v37, 0.0 }
 0x2d2   :  { %v3337_v60 = vpop.f32.mrf.mxu1  ;;  %3434 = vmatmul.mubr.msk.f32.gmra.mxu1 %vm1266_vm0, %v1945_v31 }
 0x2d3   :  { %v1946_v42 = vmax.f32 %v1716_v54, 0.0  ;;  %v1731_v5 = vadd.f32 %v3337_v60, %v4524_v27 }
 0x2d4   :  { %v1725_v55 = vpop.f32.mrf.mxu1 }
 0x2d5   :  { %v1726_v53 = vadd.f32 %v4524_v27, %v1725_v55  ;;  %3436 = vmatprep.mubr.msk.f32.mxu1 %vm1266_vm0, %v1946_v42  ;;  %v1949_v0 = vmax.f32 %v1731_v5, 0.0 }
 0x2d6   :  { %v3340_v35 = vpop.f32.mrf.mxu1  ;;  %3437 = vmatmul.mubr.msk.f32.gmra.mxu1 %vm1266_vm0, %v1947_v63 }
 0x2d7   :  { %v1948_v58 = vmax.f32 %v1726_v53, 0.0  ;;  %v1741_v41 = vadd.f32 %v3340_v35, %v4524_v27 }
 0x2d8   :  { %v1735_v61 = vpop.f32.mrf.mxu1 }
 0x2d9   :  { %v1736_v15 = vadd.f32 %v4524_v27, %v1735_v61  ;;  %3439 = vmatprep.mubr.msk.f32.mxu1 %vm1266_vm0, %v1948_v58  ;;  %v1951_v10 = vmax.f32 %v1741_v41, 0.0 }
 0x2da   :  { %v3343_v21 = vpop.f32.mrf.mxu1  ;;  %3440 = vmatmul.mubr.msk.f32.gmra.mxu1 %vm1266_vm0, %v1949_v0 }
 0x2db   :  { %v1950_v20 = vmax.f32 %v1736_v15, 0.0  ;;  %v1751_v62 = vadd.f32 %v3343_v21, %v4524_v27 }
 0x2dc   :  { %v1745_v4 = vpop.f32.mrf.mxu1 }
 0x2dd   :  { %v1746_v16 = vadd.f32 %v4524_v27, %v1745_v4  ;;  %3442 = vmatprep.mubr.msk.f32.mxu1 %vm1266_vm0, %v1950_v20  ;;  %v1953_v28 = vmax.f32 %v1751_v62, 0.0 }
 0x2de   :  { %v3346_v39 = vpop.f32.mrf.mxu1  ;;  %3443 = vmatmul.mubr.msk.f32.gmra.mxu1 %vm1266_vm0, %v1951_v10 }
 0x2df   :  { %v1952_v45 = vmax.f32 %v1746_v16, 0.0  ;;  %v1761_v51 = vadd.f32 %v3346_v39, %v4524_v27 }
 0x2e0   :  { %v1755_v3 = vpop.f32.mrf.mxu1 }
 0x2e1   :  { %v1756_v2 = vadd.f32 %v4524_v27, %v1755_v3  ;;  %3445 = vmatprep.mubr.msk.f32.mxu1 %vm1266_vm0, %v1952_v45  ;;  %v1955_v25 = vmax.f32 %v1761_v51, 0.0 }
 0x2e2   :  { %v3349_v8 = vpop.f32.mrf.mxu1  ;;  %3446 = vmatmul.mubr.msk.f32.gmra.mxu1 %vm1266_vm0, %v1953_v28 }
 0x2e3   :  { %v1954_v19 = vmax.f32 %v1756_v2, 0.0  ;;  %v1771_v14 = vadd.f32 %v3349_v8, %v4524_v27 }
 0x2e4   :  { %v1765_v43 = vpop.f32.mrf.mxu1 }
 0x2e5   :  { %v1766_v47 = vadd.f32 %v4524_v27, %v1765_v43  ;;  %3448 = vmatprep.mubr.msk.f32.mxu1 %vm1266_vm0, %v1954_v19  ;;  %v1957_v6 = vmax.f32 %v1771_v14, 0.0 }
 0x2e6   :  { %v3352_v9 = vpop.f32.mrf.mxu1  ;;  %3449 = vmatmul.mubr.msk.f32.gmra.mxu1 %vm1266_vm0, %v1955_v25 }
 0x2e7   :  { %v1956_v24 = vmax.f32 %v1766_v47, 0.0  ;;  %v1781_v26 = vadd.f32 %v3352_v9, %v4524_v27 }
 0x2e8   :  { %v1775_v12 = vpop.f32.mrf.mxu1 }
 0x2e9   :  { %v1776_v57 = vadd.f32 %v4524_v27, %v1775_v12  ;;  %3451 = vmatprep.mubr.msk.f32.mxu1 %vm1266_vm0, %v1956_v24  ;;  %v1959_v46 = vmax.f32 %v1781_v26, 0.0 }
 0x2ea   :  { %v3355_v59 = vpop.f32.mrf.mxu1  ;;  %3452 = vmatmul.mubr.msk.f32.gmra.mxu1 %vm1266_vm0, %v1957_v6 }
 0x2eb   :  { %v1958_v23 = vmax.f32 %v1776_v57, 0.0  ;;  %v1791_v49 = vadd.f32 %v3355_v59, %v4524_v27 }
 0x2ec   :  { %v1785_v29 = vpop.f32.mrf.mxu1 }
 0x2ed   :  { %v1786_v1 = vadd.f32 %v4524_v27, %v1785_v29  ;;  %3454 = vmatprep.mubr.msk.f32.mxu1 %vm1266_vm0, %v1958_v23  ;;  %v1961_v7 = vmax.f32 %v1791_v49, 0.0 }
 0x2ee   :  { %v3358_v36 = vpop.f32.mrf.mxu1  ;;  %3455 = vmatmul.mubr.msk.f32.gmra.mxu1 %vm1266_vm0, %v1959_v46 }
 0x2ef   :  { %v1960_v30 = vmax.f32 %v1786_v1, 0.0  ;;  %v1801_v13 = vadd.f32 %v3358_v36, %v4524_v27 }
 0x2f0   :  { %v1795_v48 = vpop.f32.mrf.mxu1 }
 0x2f1   :  { %v1796_v52 = vadd.f32 %v4524_v27, %v1795_v48  ;;  %3457 = vmatprep.mubr.msk.f32.mxu1 %vm1266_vm0, %v1960_v30  ;;  %v1963_v32 = vmax.f32 %v1801_v13, 0.0 }
 0x2f2   :  { %v3361_v44 = vpop.f32.mrf.mxu1  ;;  %3458 = vmatmul.mubr.msk.f32.gmra.mxu1 %vm1266_vm0, %v1961_v7 }
 0x2f3   :  { %v1962_v33 = vmax.f32 %v1796_v52, 0.0  ;;  %v1811_v22 = vadd.f32 %v3361_v44, %v4524_v27 }
 0x2f4   :  { %v1805_v18 = vpop.f32.mrf.mxu1 }
 0x2f5   :  { %v1806_v38 = vadd.f32 %v4524_v27, %v1805_v18  ;;  %3460 = vmatprep.mubr.msk.f32.mxu1 %vm1266_vm0, %v1962_v33  ;;  %v1965_v34 = vmax.f32 %v1811_v22, 0.0 }
 0x2f6   :  { %v3364_v50 = vpop.f32.mrf.mxu1  ;;  %3461 = vmatmul.mubr.msk.f32.gmra.mxu1 %vm1266_vm0, %v1963_v32 }
 0x2f7   :  { %v1964_v56 = vmax.f32 %v1806_v38, 0.0  ;;  %v1821_v40 = vadd.f32 %v3364_v50, %v4524_v27 }
 0x2f8   :  { %v1815_v11 = vpop.f32.mrf.mxu1 }
 0x2f9   :  { %v1816_v31 = vadd.f32 %v4524_v27, %v1815_v11  ;;  %3463 = vmatprep.mubr.msk.f32.mxu1 %vm1266_vm0, %v1964_v56  ;;  %v1967_v54 = vmax.f32 %v1821_v40, 0.0 }
 0x2fa   :  { %v3367_v37 = vpop.f32.mrf.mxu1  ;;  %3464 = vmatmul.mubr.msk.f32.gmra.mxu1 %vm1266_vm0, %v1965_v34 }
 0x2fb   :  { %v1966_v17 = vmax.f32 %v1816_v31, 0.0  ;;  %v1831_v60 = vadd.f32 %v3367_v37, %v4524_v27  ;;  %v4657_v31 = vld [vmem:[%s4921_s6] ss:$0 sm:$0xff] }
 0x2fc   :  { %v1825_v42 = vpop.f32.mrf.mxu1 }
 0x2fd   :  { %v1826_v63 = vadd.f32 %v4524_v27, %v1825_v42  ;;  %3466 = vmatprep.mubr.msk.f32.mxu1 %vm1266_vm0, %v1966_v17  ;;  %v1969_v53 = vmax.f32 %v1831_v60, 0.0 }
 0x2fe   :  { %v3370_v5 = vpop.f32.mrf.mxu1  ;;  %3467 = vmatmul.mubr.msk.f32.gmra.mxu1 %vm1266_vm0, %v1967_v54 }
 0x2ff   :  { %v1968_v55 = vmax.f32 %v1826_v63, 0.0  ;;  %v1841_v35 = vadd.f32 %v3370_v5, %v4524_v27 }
 0x300   :  { %v1835_v58 = vpop.f32.mrf.mxu1 }
 0x301   :  { %v1836_v0 = vadd.f32 %v4524_v27, %v1835_v58  ;;  %3469 = vmatprep.mubr.msk.f32.mxu1 %vm1266_vm0, %v1968_v55  ;;  %v1971_v15 = vmax.f32 %v1841_v35, 0.0 }
 0x302   :  { %v3373_v41 = vpop.f32.mrf.mxu1  ;;  %3470 = vmatmul.mubr.msk.f32.gmra.mxu1 %vm1266_vm0, %v1969_v53 }
 0x303   :  { %v1970_v61 = vmax.f32 %v1836_v0, 0.0  ;;  %v1851_v21 = vadd.f32 %v3373_v41, %v4524_v27 }
 0x304   :  { %v1845_v20 = vpop.f32.mrf.mxu1 }
 0x305   :  { %v1846_v10 = vadd.f32 %v4524_v27, %v1845_v20  ;;  %3472 = vmatprep.mubr.msk.f32.mxu1 %vm1266_vm0, %v1970_v61  ;;  %v1973_v16 = vmax.f32 %v1851_v21, 0.0 }
 0x306   :  { %v3376_v62 = vpop.f32.mrf.mxu1  ;;  %3473 = vmatmul.mubr.msk.f32.gmra.mxu1 %vm1266_vm0, %v1971_v15 }
 0x307   :  { %v1972_v4 = vmax.f32 %v1846_v10, 0.0  ;;  %v1861_v39 = vadd.f32 %v3376_v62, %v4524_v27 }
 0x308   :  { %v1855_v45 = vpop.f32.mrf.mxu1 }
 0x309   :  { %v1856_v28 = vadd.f32 %v4524_v27, %v1855_v45  ;;  %3475 = vmatprep.mubr.msk.f32.mxu1 %vm1266_vm0, %v1972_v4  ;;  %v1975_v2 = vmax.f32 %v1861_v39, 0.0 }
 0x30a   :  { %v3379_v51 = vpop.f32.mrf.mxu1  ;;  %3476 = vmatmul.mubr.msk.f32.gmra.mxu1 %vm1266_vm0, %v1973_v16 }
 0x30b   :  { %v1974_v3 = vmax.f32 %v1856_v28, 0.0  ;;  %v1871_v8 = vadd.f32 %v3379_v51, %v4524_v27 }
 0x30c   :  { %v1865_v19 = vpop.f32.mrf.mxu1 }
 0x30d   :  { %v1866_v25 = vadd.f32 %v4524_v27, %v1865_v19  ;;  %3478 = vmatprep.mubr.msk.f32.mxu1 %vm1266_vm0, %v1974_v3  ;;  %v1977_v47 = vmax.f32 %v1871_v8, 0.0 }
 0x30e   :  { %v3382_v14 = vpop.f32.mrf.mxu1  ;;  %3479 = vmatmul.mubr.msk.f32.gmra.mxu1 %vm1266_vm0, %v1975_v2 }
 0x30f   :  { %v1976_v43 = vmax.f32 %v1866_v25, 0.0  ;;  %v1881_v9 = vadd.f32 %v3382_v14, %v4524_v27 }
 0x310   :  { %v1875_v24 = vpop.f32.mrf.mxu1 }
 0x311   :  { %v1876_v6 = vadd.f32 %v4524_v27, %v1875_v24  ;;  %3481 = vmatprep.mubr.msk.f32.mxu1 %vm1266_vm0, %v1976_v43  ;;  %v1979_v57 = vmax.f32 %v1881_v9, 0.0 }
 0x312   :  { %v3385_v26 = vpop.f32.mrf.mxu1  ;;  %3482 = vmatmul.mubr.msk.f32.gmra.mxu1 %vm1266_vm0, %v1977_v47 }
 0x313   :  { %v1978_v12 = vmax.f32 %v1876_v6, 0.0  ;;  %v1891_v59 = vadd.f32 %v3385_v26, %v4524_v27 }
 0x314   :  { %v1885_v23 = vpop.f32.mrf.mxu1 }
 0x315   :  { %v1886_v46 = vadd.f32 %v4524_v27, %v1885_v23  ;;  %3484 = vmatprep.mubr.msk.f32.mxu1 %vm1266_vm0, %v1978_v12  ;;  %v1981_v1 = vmax.f32 %v1891_v59, 0.0 }
 0x316   :  { %v3388_v49 = vpop.f32.mrf.mxu1  ;;  %3485 = vmatmul.mubr.msk.f32.gmra.mxu1 %vm1266_vm0, %v1979_v57 }
 0x317   :  { %v1980_v29 = vmax.f32 %v1886_v46, 0.0  ;;  %v1901_v36 = vadd.f32 %v3388_v49, %v4524_v27 }
 0x318   :  { %v1895_v30 = vpop.f32.mrf.mxu1 }
 0x319   :  { %v1896_v7 = vadd.f32 %v4524_v27, %v1895_v30  ;;  %3487 = vmatprep.mubr.msk.f32.mxu1 %vm1266_vm0, %v1980_v29  ;;  %v1983_v52 = vmax.f32 %v1901_v36, 0.0 }
 0x31a   :  { %v3391_v13 = vpop.f32.mrf.mxu1  ;;  %3488 = vmatmul.mubr.msk.f32.gmra.mxu1 %vm1266_vm0, %v1981_v1 }
 0x31b   :  { %v1982_v48 = vmax.f32 %v1896_v7, 0.0  ;;  %v1911_v44 = vadd.f32 %v3391_v13, %v4524_v27 }
 0x31c   :  { %v1905_v33 = vpop.f32.mrf.mxu1 }
 0x31d   :  { %v1906_v32 = vadd.f32 %v4524_v27, %v1905_v33  ;;  %3490 = vmatprep.mubr.msk.f32.mxu1 %vm1266_vm0, %v1982_v48  ;;  %v1985_v38 = vmax.f32 %v1911_v44, 0.0 }
 0x31e   :  { %v3394_v22 = vpop.f32.mrf.mxu1  ;;  %3491 = vmatmul.mubr.msk.f32.gmra.mxu1 %vm1266_vm0, %v1983_v52 }
 0x31f   :  { %v1984_v18 = vmax.f32 %v1906_v32, 0.0  ;;  %v1921_v50 = vadd.f32 %v3394_v22, %v4524_v27 }
 0x320   :  { %v1915_v56 = vpop.f32.mrf.mxu1 }
 0x321   :  { %v1916_v34 = vadd.f32 %v4524_v27, %v1915_v56  ;;  %3493 = vmatprep.mubr.msk.f32.mxu1 %vm1266_vm0, %v1984_v18  ;;  %v1987_v11 = vmax.f32 %v1921_v50, 0.0 }
 0x322   :  { %3494 = vmatmul.mubr.msk.f32.gmra.mxu1 %vm1266_vm0, %v1985_v38 }
 0x323   :  { %v1986_v40 = vmax.f32 %v1916_v34, 0.0 }
 0x325   :  { %3496 = vmatprep.mubr.msk.f32.mxu1 %vm1266_vm0, %v1986_v40 }
 0x326   :  { %3497 = vmatmul.mubr.msk.f32.gmra.mxu1 %vm1266_vm0, %v1987_v11 }
 0x36a   :  { %v3405_v37 = vpop.f32.mrf.mxu1 }
 0x36b   :  { %v2263_v17 = vadd.f32 %v3405_v37, %v4657_v31 }
 0x36c   :  { %v2257_v54 = vpop.f32.mrf.mxu1 }
 0x36d   :  { %2577 = vst [vmem:[%s4922_s7 + $0x8] sm:$0xff] %v2263_v17  ;;  %v2258_v27 = vadd.f32 %v4657_v31, %v2257_v54 }
 0x36e   :  { %v3408_v60 = vpop.f32.mrf.mxu1 }
 0x36f   :  { %2576 = vst [vmem:[%s4922_s7] sm:$0xff] %v2258_v27  ;;  %v2273_v42 = vadd.f32 %v3408_v60, %v4657_v31 }
 0x370   :  { %v2267_v63 = vpop.f32.mrf.mxu1 }
 0x371   :  { %2579 = vst [vmem:[%s4922_s7 + $0x18] sm:$0xff] %v2273_v42  ;;  %v2268_v5 = vadd.f32 %v4657_v31, %v2267_v63 }
 0x372   :  { %v3411_v55 = vpop.f32.mrf.mxu1 }
 0x373   :  { %2578 = vst [vmem:[%s4922_s7 + $0x10] sm:$0xff] %v2268_v5  ;;  %v2283_v53 = vadd.f32 %v3411_v55, %v4657_v31 }
 0x374   :  { %v2277_v35 = vpop.f32.mrf.mxu1 }
 0x375   :  { %2581 = vst [vmem:[%s4922_s7 + $0x28] sm:$0xff] %v2283_v53  ;;  %v2278_v58 = vadd.f32 %v4657_v31, %v2277_v35 }
 0x376   :  { %v3414_v0 = vpop.f32.mrf.mxu1 }
 0x377   :  { %2580 = vst [vmem:[%s4922_s7 + $0x20] sm:$0xff] %v2278_v58  ;;  %v2293_v41 = vadd.f32 %v3414_v0, %v4657_v31 }
 0x378   :  { %v2287_v61 = vpop.f32.mrf.mxu1 }
 0x379   :  { %2583 = vst [vmem:[%s4922_s7 + $0x38] sm:$0xff] %v2293_v41  ;;  %v2288_v15 = vadd.f32 %v4657_v31, %v2287_v61 }
 0x37a   :  { %v3417_v21 = vpop.f32.mrf.mxu1 }
 0x37b   :  { %2582 = vst [vmem:[%s4922_s7 + $0x30] sm:$0xff] %v2288_v15  ;;  %v2303_v20 = vadd.f32 %v3417_v21, %v4657_v31 }
 0x37c   :  { %v2297_v10 = vpop.f32.mrf.mxu1 }
 0x37d   :  { %2585 = vst [vmem:[%s4922_s7 + $0x48] sm:$0xff] %v2303_v20  ;;  %v2298_v62 = vadd.f32 %v4657_v31, %v2297_v10 }
 0x37e   :  { %v3420_v4 = vpop.f32.mrf.mxu1 }
 0x37f   :  { %2584 = vst [vmem:[%s4922_s7 + $0x40] sm:$0xff] %v2298_v62  ;;  %v2313_v16 = vadd.f32 %v3420_v4, %v4657_v31 }
 0x380   :  { %v2307_v39 = vpop.f32.mrf.mxu1 }
 0x381   :  { %2587 = vst [vmem:[%s4922_s7 + $0x58] sm:$0xff] %v2313_v16  ;;  %v2308_v45 = vadd.f32 %v4657_v31, %v2307_v39 }
 0x382   :  { %v3423_v28 = vpop.f32.mrf.mxu1 }
 0x383   :  { %2586 = vst [vmem:[%s4922_s7 + $0x50] sm:$0xff] %v2308_v45  ;;  %v2323_v51 = vadd.f32 %v3423_v28, %v4657_v31 }
 0x384   :  { %v2317_v3 = vpop.f32.mrf.mxu1 }
 0x385   :  { %2589 = vst [vmem:[%s4922_s7 + $0x68] sm:$0xff] %v2323_v51  ;;  %v2318_v2 = vadd.f32 %v4657_v31, %v2317_v3 }
 0x386   :  { %v3426_v8 = vpop.f32.mrf.mxu1 }
 0x387   :  { %2588 = vst [vmem:[%s4922_s7 + $0x60] sm:$0xff] %v2318_v2  ;;  %v2333_v19 = vadd.f32 %v3426_v8, %v4657_v31 }
 0x388   :  { %v2327_v25 = vpop.f32.mrf.mxu1 }
 0x389   :  { %2591 = vst [vmem:[%s4922_s7 + $0x78] sm:$0xff] %v2333_v19  ;;  %v2328_v14 = vadd.f32 %v4657_v31, %v2327_v25 }
 0x38a   :  { %v3429_v43 = vpop.f32.mrf.mxu1 }
 0x38b   :  { %2590 = vst [vmem:[%s4922_s7 + $0x70] sm:$0xff] %v2328_v14  ;;  %v2343_v47 = vadd.f32 %v3429_v43, %v4657_v31 }
 0x38c   :  { %v2337_v9 = vpop.f32.mrf.mxu1 }
 0x38d   :  { %2593 = vst [vmem:[%s4922_s7 + $0x88] sm:$0xff] %v2343_v47  ;;  %v2338_v24 = vadd.f32 %v4657_v31, %v2337_v9 }
 0x38e   :  { %v3432_v6 = vpop.f32.mrf.mxu1 }
 0x38f   :  { %2592 = vst [vmem:[%s4922_s7 + $0x80] sm:$0xff] %v2338_v24  ;;  %v2353_v26 = vadd.f32 %v3432_v6, %v4657_v31 }
 0x390   :  { %v2347_v12 = vpop.f32.mrf.mxu1 }
 0x391   :  { %2595 = vst [vmem:[%s4922_s7 + $0x98] sm:$0xff] %v2353_v26  ;;  %v2348_v57 = vadd.f32 %v4657_v31, %v2347_v12 }
 0x392   :  { %v3435_v59 = vpop.f32.mrf.mxu1 }
 0x393   :  { %2594 = vst [vmem:[%s4922_s7 + $0x90] sm:$0xff] %v2348_v57  ;;  %v2363_v23 = vadd.f32 %v3435_v59, %v4657_v31 }
 0x394   :  { %v2357_v46 = vpop.f32.mrf.mxu1 }
 0x395   :  { %2597 = vst [vmem:[%s4922_s7 + $0xa8] sm:$0xff] %v2363_v23  ;;  %v2358_v49 = vadd.f32 %v4657_v31, %v2357_v46 }
 0x396   :  { %v3438_v29 = vpop.f32.mrf.mxu1 }
 0x397   :  { %2596 = vst [vmem:[%s4922_s7 + $0xa0] sm:$0xff] %v2358_v49  ;;  %v2373_v1 = vadd.f32 %v3438_v29, %v4657_v31 }
 0x398   :  { %v2367_v36 = vpop.f32.mrf.mxu1 }
 0x399   :  { %2599 = vst [vmem:[%s4922_s7 + $0xb8] sm:$0xff] %v2373_v1  ;;  %v2368_v30 = vadd.f32 %v4657_v31, %v2367_v36 }
 0x39a   :  { %v3441_v7 = vpop.f32.mrf.mxu1 }
 0x39b   :  { %2598 = vst [vmem:[%s4922_s7 + $0xb0] sm:$0xff] %v2368_v30  ;;  %v2383_v13 = vadd.f32 %v3441_v7, %v4657_v31 }
 0x39c   :  { %v2377_v48 = vpop.f32.mrf.mxu1 }
 0x39d   :  { %2601 = vst [vmem:[%s4922_s7 + $0xc8] sm:$0xff] %v2383_v13  ;;  %v2378_v52 = vadd.f32 %v4657_v31, %v2377_v48 }
 0x39e   :  { %v3444_v44 = vpop.f32.mrf.mxu1 }
 0x39f   :  { %2600 = vst [vmem:[%s4922_s7 + $0xc0] sm:$0xff] %v2378_v52  ;;  %v2393_v33 = vadd.f32 %v3444_v44, %v4657_v31 }
 0x3a0   :  { %v2387_v32 = vpop.f32.mrf.mxu1 }
 0x3a1   :  { %2603 = vst [vmem:[%s4922_s7 + $0xd8] sm:$0xff] %v2393_v33  ;;  %v2388_v22 = vadd.f32 %v4657_v31, %v2387_v32 }
 0x3a2   :  { %v3447_v18 = vpop.f32.mrf.mxu1 }
 0x3a3   :  { %2602 = vst [vmem:[%s4922_s7 + $0xd0] sm:$0xff] %v2388_v22  ;;  %v2403_v38 = vadd.f32 %v3447_v18, %v4657_v31 }
 0x3a4   :  { %v2397_v50 = vpop.f32.mrf.mxu1 }
 0x3a5   :  { %2605 = vst [vmem:[%s4922_s7 + $0xe8] sm:$0xff] %v2403_v38  ;;  %v2398_v56 = vadd.f32 %v4657_v31, %v2397_v50 }
 0x3a6   :  { %v3450_v34 = vpop.f32.mrf.mxu1 }
 0x3a7   :  { %2604 = vst [vmem:[%s4922_s7 + $0xe0] sm:$0xff] %v2398_v56  ;;  %v2413_v40 = vadd.f32 %v3450_v34, %v4657_v31 }
 0x3a8   :  { %v2407_v11 = vpop.f32.mrf.mxu1 }
 0x3a9   :  { %2607 = vst [vmem:[%s4922_s7 + $0xf8] sm:$0xff] %v2413_v40  ;;  %v2408_v37 = vadd.f32 %v4657_v31, %v2407_v11 }
 0x3aa   :  { %v3453_v17 = vpop.f32.mrf.mxu1 }
 0x3ab   :  { %2606 = vst [vmem:[%s4922_s7 + $0xf0] sm:$0xff] %v2408_v37  ;;  %v2423_v54 = vadd.f32 %v3453_v17, %v4657_v31 }
 0x3ac   :  { %v2417_v27 = vpop.f32.mrf.mxu1 }
 0x3ad   :  { %2609 = vst [vmem:[%s4922_s7 + $0x108] sm:$0xff] %v2423_v54  ;;  %v2418_v60 = vadd.f32 %v4657_v31, %v2417_v27 }
 0x3ae   :  { %v3456_v42 = vpop.f32.mrf.mxu1 }
 0x3af   :  { %2608 = vst [vmem:[%s4922_s7 + $0x100] sm:$0xff] %v2418_v60  ;;  %v2433_v63 = vadd.f32 %v3456_v42, %v4657_v31 }
 0x3b0   :  { %v2427_v5 = vpop.f32.mrf.mxu1 }
 0x3b1   :  { %2611 = vst [vmem:[%s4922_s7 + $0x118] sm:$0xff] %v2433_v63  ;;  %v2428_v55 = vadd.f32 %v4657_v31, %v2427_v5 }
 0x3b2   :  { %v3459_v53 = vpop.f32.mrf.mxu1 }
 0x3b3   :  { %2610 = vst [vmem:[%s4922_s7 + $0x110] sm:$0xff] %v2428_v55  ;;  %v2443_v35 = vadd.f32 %v3459_v53, %v4657_v31 }
 0x3b4   :  { %v2437_v58 = vpop.f32.mrf.mxu1 }
 0x3b5   :  { %2613 = vst [vmem:[%s4922_s7 + $0x128] sm:$0xff] %v2443_v35  ;;  %v2438_v0 = vadd.f32 %v4657_v31, %v2437_v58 }
 0x3b6   :  { %v3462_v41 = vpop.f32.mrf.mxu1 }
 0x3b7   :  { %2612 = vst [vmem:[%s4922_s7 + $0x120] sm:$0xff] %v2438_v0  ;;  %v2453_v61 = vadd.f32 %v3462_v41, %v4657_v31 }
 0x3b8   :  { %v2447_v15 = vpop.f32.mrf.mxu1 }
 0x3b9   :  { %2615 = vst [vmem:[%s4922_s7 + $0x138] sm:$0xff] %v2453_v61  ;;  %v2448_v21 = vadd.f32 %v4657_v31, %v2447_v15 }
 0x3ba   :  { %v3465_v20 = vpop.f32.mrf.mxu1 }
 0x3bb   :  { %2614 = vst [vmem:[%s4922_s7 + $0x130] sm:$0xff] %v2448_v21  ;;  %v2463_v10 = vadd.f32 %v3465_v20, %v4657_v31 }
 0x3bc   :  { %v2457_v62 = vpop.f32.mrf.mxu1 }
 0x3bd   :  { %2617 = vst [vmem:[%s4922_s7 + $0x148] sm:$0xff] %v2463_v10  ;;  %v2458_v4 = vadd.f32 %v4657_v31, %v2457_v62 }
 0x3be   :  { %v3468_v16 = vpop.f32.mrf.mxu1 }
 0x3bf   :  { %2616 = vst [vmem:[%s4922_s7 + $0x140] sm:$0xff] %v2458_v4  ;;  %v2473_v39 = vadd.f32 %v3468_v16, %v4657_v31 }
 0x3c0   :  { %v2467_v45 = vpop.f32.mrf.mxu1 }
 0x3c1   :  { %2619 = vst [vmem:[%s4922_s7 + $0x158] sm:$0xff] %v2473_v39  ;;  %v2468_v28 = vadd.f32 %v4657_v31, %v2467_v45 }
 0x3c2   :  { %v3471_v51 = vpop.f32.mrf.mxu1 }
 0x3c3   :  { %2618 = vst [vmem:[%s4922_s7 + $0x150] sm:$0xff] %v2468_v28  ;;  %v2483_v3 = vadd.f32 %v3471_v51, %v4657_v31 }
 0x3c4   :  { %v2477_v2 = vpop.f32.mrf.mxu1 }
 0x3c5   :  { %2621 = vst [vmem:[%s4922_s7 + $0x168] sm:$0xff] %v2483_v3  ;;  %v2478_v8 = vadd.f32 %v4657_v31, %v2477_v2 }
 0x3c6   :  { %v3474_v19 = vpop.f32.mrf.mxu1 }
 0x3c7   :  { %2620 = vst [vmem:[%s4922_s7 + $0x160] sm:$0xff] %v2478_v8  ;;  %v2493_v25 = vadd.f32 %v3474_v19, %v4657_v31 }
 0x3c8   :  { %v2487_v14 = vpop.f32.mrf.mxu1 }
 0x3c9   :  { %2623 = vst [vmem:[%s4922_s7 + $0x178] sm:$0xff] %v2493_v25  ;;  %v2488_v43 = vadd.f32 %v4657_v31, %v2487_v14 }
 0x3ca   :  { %v3477_v47 = vpop.f32.mrf.mxu1 }
 0x3cb   :  { %2622 = vst [vmem:[%s4922_s7 + $0x170] sm:$0xff] %v2488_v43  ;;  %v2503_v9 = vadd.f32 %v3477_v47, %v4657_v31 }
 0x3cc   :  { %v2497_v24 = vpop.f32.mrf.mxu1 }
 0x3cd   :  { %2625 = vst [vmem:[%s4922_s7 + $0x188] sm:$0xff] %v2503_v9  ;;  %v2498_v6 = vadd.f32 %v4657_v31, %v2497_v24 }
 0x3ce   :  { %v3480_v26 = vpop.f32.mrf.mxu1 }
 0x3cf   :  { %2624 = vst [vmem:[%s4922_s7 + $0x180] sm:$0xff] %v2498_v6  ;;  %v2513_v12 = vadd.f32 %v3480_v26, %v4657_v31 }
 0x3d0   :  { %v2507_v57 = vpop.f32.mrf.mxu1 }
 0x3d1   :  { %2627 = vst [vmem:[%s4922_s7 + $0x198] sm:$0xff] %v2513_v12  ;;  %v2508_v59 = vadd.f32 %v4657_v31, %v2507_v57 }
 0x3d2   :  { %v3483_v23 = vpop.f32.mrf.mxu1 }
 0x3d3   :  { %2626 = vst [vmem:[%s4922_s7 + $0x190] sm:$0xff] %v2508_v59  ;;  %v2523_v46 = vadd.f32 %v3483_v23, %v4657_v31 }
 0x3d4   :  { %v2517_v49 = vpop.f32.mrf.mxu1 }
 0x3d5   :  { %2629 = vst [vmem:[%s4922_s7 + $0x1a8] sm:$0xff] %v2523_v46  ;;  %v2518_v29 = vadd.f32 %v4657_v31, %v2517_v49 }
 0x3d6   :  { %v3486_v1 = vpop.f32.mrf.mxu1 }
 0x3d7   :  { %2628 = vst [vmem:[%s4922_s7 + $0x1a0] sm:$0xff] %v2518_v29  ;;  %v2533_v36 = vadd.f32 %v3486_v1, %v4657_v31 }
 0x3d8   :  { %v2527_v30 = vpop.f32.mrf.mxu1 }
 0x3d9   :  { %2631 = vst [vmem:[%s4922_s7 + $0x1b8] sm:$0xff] %v2533_v36  ;;  %v2528_v7 = vadd.f32 %v4657_v31, %v2527_v30 }
 0x3da   :  { %v3489_v13 = vpop.f32.mrf.mxu1 }
 0x3db   :  { %2630 = vst [vmem:[%s4922_s7 + $0x1b0] sm:$0xff] %v2528_v7  ;;  %v2543_v48 = vadd.f32 %v3489_v13, %v4657_v31 }
 0x3dc   :  { %v2537_v52 = vpop.f32.mrf.mxu1 }
 0x3dd   :  { %2633 = vst [vmem:[%s4922_s7 + $0x1c8] sm:$0xff] %v2543_v48  ;;  %v2538_v44 = vadd.f32 %v4657_v31, %v2537_v52 }
 0x3de   :  { %v3492_v33 = vpop.f32.mrf.mxu1 }
 0x3df   :  { %2632 = vst [vmem:[%s4922_s7 + $0x1c0] sm:$0xff] %v2538_v44  ;;  %v2553_v32 = vadd.f32 %v3492_v33, %v4657_v31 }
 0x3e0   :  { %v2547_v22 = vpop.f32.mrf.mxu1 }
 0x3e1   :  { %2635 = vst [vmem:[%s4922_s7 + $0x1d8] sm:$0xff] %v2553_v32  ;;  %v2548_v18 = vadd.f32 %v4657_v31, %v2547_v22 }
 0x3e2   :  { %v3495_v38 = vpop.f32.mrf.mxu1 }
 0x3e3   :  { %2634 = vst [vmem:[%s4922_s7 + $0x1d0] sm:$0xff] %v2548_v18  ;;  %v2563_v50 = vadd.f32 %v3495_v38, %v4657_v31 }
 0x3e4   :  { %v2557_v56 = vpop.f32.mrf.mxu1 }
 0x3e5   :  { %2637 = vst [vmem:[%s4922_s7 + $0x1e8] sm:$0xff] %v2563_v50  ;;  %v2558_v34 = vadd.f32 %v4657_v31, %v2557_v56 }
 0x3e6   :  { %v3498_v40 = vpop.f32.mrf.mxu1 }
 0x3e7   :  { %2636 = vst [vmem:[%s4922_s7 + $0x1e0] sm:$0xff] %v2558_v34  ;;  %v2573_v11 = vadd.f32 %v3498_v40, %v4657_v31 }
 0x3e8   :  { %v2567_v37 = vpop.f32.mrf.mxu1 }
 0x3e9   :  { %2639 = vst [vmem:[%s4922_s7 + $0x1f8] sm:$0xff] %v2573_v11  ;;  %v2568_v17 = vadd.f32 %v4657_v31, %v2567_v37 }
 0x3eb   :  { %2638 = vst [vmem:[%s4922_s7 + $0x1f0] sm:$0xff] %v2568_v17 }

</bundles_post_ra>
